<compile_context>
chip_gen: v5e
topology: v5e:2x2
jax: 0.10.0
libtpu: 0.0.40
codegen_flags: <defaults>
</compile_context>

<pallas_src>
from functools import partial

import jax
import jax.numpy as jnp
from jax.experimental import pallas as pl
from jax.experimental.pallas import tpu as pltpu


# ----------------------------------------------------------------------------
# Fused kernel: num_layers LSTM layers + FC head, single invocation (grid=()).
# Ref order: x, (w_ih^T, w_hh^T, bias) per layer, w_fc^T(pad), b_fc(pad), out.
# ----------------------------------------------------------------------------
def _make_fused_kernel(S, Bp, H, num_layers):
    def kernel(*refs):
        x_ref = refs[0]
        layer_refs = refs[1:1 + 3 * num_layers]
        wfc_ref, bfc_ref, out_ref = refs[1 + 3 * num_layers:]

        layer_in = x_ref[...]                                    # (S*Bp, I)
        for l in range(num_layers):
            wih = layer_refs[3 * l + 0][...]                     # (I or H, 4H)
            whh = layer_refs[3 * l + 1][...]                     # (H, 4H)
            b = layer_refs[3 * l + 2][...]                       # (1, 4H)

            # Input projection for ALL timesteps in one MXU matmul, bias
            # folded in once (hoisted out of the serial recurrence).
            gx = jnp.dot(layer_in, wih,
                         preferred_element_type=jnp.float32) + b   # (S*Bp, 4H)

            h = jnp.zeros((Bp, H), jnp.float32)
            c = jnp.zeros((Bp, H), jnp.float32)
            hs = []
            for t in range(S):                                   # static unroll (S small)
                # Aligned (8,128)-tile slice: t*Bp is a sublane-tile boundary.
                gates = gx[t * Bp:(t + 1) * Bp, :] + jnp.dot(
                    h, whh, preferred_element_type=jnp.float32)  # (Bp, 4H)
                # One sigmoid + one tanh pass over the full lane-dense tile,
                # then slice gates (PyTorch order [i, f, g, o]).
                sg = jax.nn.sigmoid(gates)
                tg = jnp.tanh(gates)
                i_g = sg[:, 0 * H:1 * H]
                f_g = sg[:, 1 * H:2 * H]
                g_g = tg[:, 2 * H:3 * H]
                o_g = sg[:, 3 * H:4 * H]
                c = f_g * c + i_g * g_g
                h = o_g * jnp.tanh(c)
                hs.append(h)                                     # kept in vregs

            # Materialize the layer output once (no per-step VMEM stores).
            layer_in = jnp.concatenate(hs, axis=0)               # (S*Bp, H)

        # FC head on the flattened sequence; lane-dense (padded-O) writeback.
        out_ref[...] = jnp.dot(layer_in, wfc_ref[...],
                               preferred_element_type=jnp.float32) + bfc_ref[...]

    return kernel


# ----------------------------------------------------------------------------
# One-time parameter preparation (transposes / bias sum / FC lane padding),
# done OUTSIDE jit so nothing but the fused kernel runs per forward call.
# ----------------------------------------------------------------------------
def prepare_kernel_params(params, lane=128):
    H = params["lstm"][0]["w_hh"].shape[1]
    O = params["fc"]["w"].shape[0]
    O_pad = ((O + lane - 1) // lane) * lane

    layers = []
    for lp in params["lstm"]:
        layers.append({
            "wih_t": jnp.transpose(lp["w_ih"]),                     # (in, 4H)
            "whh_t": jnp.transpose(lp["w_hh"]),                     # (H, 4H)
            "b": (lp["b_ih"] + lp["b_hh"]).reshape(1, 4 * H),       # (1, 4H)
        })
    wfc_t = jnp.pad(jnp.transpose(params["fc"]["w"]),               # (H, O_pad)
                    ((0, 0), (0, O_pad - O)))
    bfc = jnp.pad(params["fc"]["b"], (0, O_pad - O)).reshape(1, O_pad)
    return {"layers": layers, "wfc_t": wfc_t, "bfc": bfc}


def lstm_forward_fused(kparams, x, output_dim):
    """x: (S, B, I) f32 -> (S, B, output_dim) f32."""
    S, B, I = x.shape
    H = kparams["layers"][0]["whh_t"].shape[0]
    num_layers = len(kparams["layers"])
    O_pad = kparams["wfc_t"].shape[1]
    B_pad = ((B + 7) // 8) * 8                                   # sublane multiple

    x_p = x if B_pad == B else jnp.pad(x, ((0, 0), (0, B_pad - B), (0, 0)))
    args = [x_p.reshape(S * B_pad, I)]
    for lp in kparams["layers"]:
        args.extend([lp["wih_t"], lp["whh_t"], lp["b"]])
    args.append(kparams["wfc_t"])
    args.append(kparams["bfc"])

    y = pl.pallas_call(
        _make_fused_kernel(S, B_pad, H, num_layers),
        out_shape=jax.ShapeDtypeStruct((S * B_pad, O_pad), jnp.float32),
        in_specs=[pl.BlockSpec(memory_space=pltpu.MemorySpace.VMEM)] * len(args),
        out_specs=pl.BlockSpec(memory_space=pltpu.MemorySpace.VMEM),
    )(*args)
    # Strip batch padding and the lane padding of the output dimension.
    return y.reshape(S, B_pad, O_pad)[:, :B, :output_dim]


@partial(jax.jit, static_argnames=("output_dim",))
def lstm_forward(kparams, x, output_dim):
    return lstm_forward_fused(kparams, x, output_dim)


# ----------------------------------------------------------------------------
# Parameter init (PyTorch nn.LSTM / nn.Linear-style uniform init & layout)
# ----------------------------------------------------------------------------
def init_params(key, input_dim, hidden_dim, output_dim, num_layers):
    params = {"lstm": [], "fc": None}
    bound = 1.0 / jnp.sqrt(hidden_dim)
    for layer in range(num_layers):
        in_dim = input_dim if layer == 0 else hidden_dim
        key, k1, k2, k3, k4 = jax.random.split(key, 5)
        params["lstm"].append({
            "w_ih": jax.random.uniform(k1, (4 * hidden_dim, in_dim),
                                       jnp.float32, -bound, bound),
            "w_hh": jax.random.uniform(k2, (4 * hidden_dim, hidden_dim),
                                       jnp.float32, -bound, bound),
            "b_ih": jax.random.uniform(k3, (4 * hidden_dim,),
                                       jnp.float32, -bound, bound),
            "b_hh": jax.random.uniform(k4, (4 * hidden_dim,),
                                       jnp.float32, -bound, bound),
        })
    key, k1, k2 = jax.random.split(key, 3)
    params["fc"] = {
        "w": jax.random.uniform(k1, (output_dim, hidden_dim),
                                jnp.float32, -bound, bound),
        "b": jax.random.uniform(k2, (output_dim,),
                                jnp.float32, -bound, bound),
    }
    return params


# ----------------------------------------------------------------------------
# Pure-JAX reference (same math as PyTorch nn.LSTM + Linear) for verification.
# ----------------------------------------------------------------------------
def lstm_forward_ref(params, x):
    S, B, _ = x.shape
    h_seq = x
    for lp in params["lstm"]:
        H = lp["w_hh"].shape[1]
        h = jnp.zeros((B, H), jnp.float32)
        c = jnp.zeros((B, H), jnp.float32)
        outs = []
        for t in range(S):
            gates = (h_seq[t] @ lp["w_ih"].T + h @ lp["w_hh"].T
                     + lp["b_ih"] + lp["b_hh"])
            i_g = jax.nn.sigmoid(gates[:, 0 * H:1 * H])
            f_g = jax.nn.sigmoid(gates[:, 1 * H:2 * H])
            g_g = jnp.tanh(gates[:, 2 * H:3 * H])
            o_g = jax.nn.sigmoid(gates[:, 3 * H:4 * H])
            c = f_g * c + i_g * g_g
            h = o_g * jnp.tanh(c)
            outs.append(h)
        h_seq = jnp.stack(outs, axis=0)
    return h_seq @ params["fc"]["w"].T + params["fc"]["b"]


if __name__ == "__main__":
    # Small shapes consistent with the module: seq=8, batch=4, input_dim=16,
    # hidden_dim=32, output_dim=1, num_layers=2.
    SEQ, BATCH, INPUT_DIM, HIDDEN_DIM, OUTPUT_DIM, NUM_LAYERS = 8, 4, 16, 32, 1, 2

    key = jax.random.PRNGKey(0)
    key, pkey, xkey = jax.random.split(key, 3)

    params = init_params(pkey, INPUT_DIM, HIDDEN_DIM, OUTPUT_DIM, NUM_LAYERS)
    kparams = prepare_kernel_params(params)           # one-time transposes/pads
    x = jax.random.normal(xkey, (SEQ, BATCH, INPUT_DIM), jnp.float32)

    y = lstm_forward(kparams, x, output_dim=OUTPUT_DIM)
    jax.block_until_ready(y)

    assert y.shape == (SEQ, BATCH, OUTPUT_DIM), y.shape
    assert y.dtype == jnp.float32

    y_ref = lstm_forward_ref(params, x)
    assert jnp.allclose(y, y_ref, rtol=1e-4, atol=1e-4), (
        float(jnp.max(jnp.abs(y - y_ref))))

    print("KERNEL_OK")
</pallas_src>

<mosaic_0001>
module attributes {stable_mosaic.version = 11 : i64} {
  func.func @kernel(%arg0: memref<64x16xf32, #tpu.memory_space<vmem>>, %arg1: memref<16x128xf32, #tpu.memory_space<vmem>>, %arg2: memref<32x128xf32, #tpu.memory_space<vmem>>, %arg3: memref<1x128xf32, #tpu.memory_space<vmem>>, %arg4: memref<32x128xf32, #tpu.memory_space<vmem>>, %arg5: memref<32x128xf32, #tpu.memory_space<vmem>>, %arg6: memref<1x128xf32, #tpu.memory_space<vmem>>, %arg7: memref<32x128xf32, #tpu.memory_space<vmem>>, %arg8: memref<1x128xf32, #tpu.memory_space<vmem>>, %arg9: memref<64x128xf32, #tpu.memory_space<vmem>>) attributes {dimension_semantics = [], scalar_prefetch = 0 : i64, scratch_operands = 0 : i64, tpu.core_type = #tpu.core_type<tc>} {
    %c0 = arith.constant 0 : index
    %c0_0 = arith.constant 0 : index
    %0 = vector.load %arg0[%c0, %c0_0] : memref<64x16xf32, #tpu.memory_space<vmem>>, vector<64x16xf32>
    %c0_1 = arith.constant 0 : index
    %c0_2 = arith.constant 0 : index
    %1 = vector.load %arg1[%c0_1, %c0_2] : memref<16x128xf32, #tpu.memory_space<vmem>>, vector<16x128xf32>
    %c0_3 = arith.constant 0 : index
    %c0_4 = arith.constant 0 : index
    %2 = vector.load %arg2[%c0_3, %c0_4] : memref<32x128xf32, #tpu.memory_space<vmem>>, vector<32x128xf32>
    %c0_5 = arith.constant 0 : index
    %c0_6 = arith.constant 0 : index
    %3 = vector.load %arg3[%c0_5, %c0_6] : memref<1x128xf32, #tpu.memory_space<vmem>>, vector<1x128xf32>
    %cst = arith.constant dense<0.000000e+00> : vector<64x128xf32>
    %4 = tpu.matmul %0, %1, %cst {dimension_numbers = #tpu.dot_dimension_numbers<[1], [0], [0], [1], [0, 0, 1, 1], [], []>} : vector<64x16xf32>, vector<16x128xf32>, vector<64x128xf32> -> vector<64x128xf32>
    %5 = vector.broadcast %3 : vector<1x128xf32> to vector<64x128xf32>
    %6 = arith.addf %4, %5 : vector<64x128xf32>
    %cst_7 = arith.constant 0.000000e+00 : f32
    %7 = vector.broadcast %cst_7 : f32 to vector<8x32xf32>
    %cst_8 = arith.constant 0.000000e+00 : f32
    %8 = vector.broadcast %cst_8 : f32 to vector<8x32xf32>
    %9 = vector.extract_strided_slice %6 {offsets = [0, 0], sizes = [8, 128], strides = [1, 1]} : vector<64x128xf32> to vector<8x128xf32>
    %cst_9 = arith.constant dense<0.000000e+00> : vector<8x128xf32>
    %10 = tpu.matmul %7, %2, %cst_9 {dimension_numbers = #tpu.dot_dimension_numbers<[1], [0], [0], [1], [0, 0, 1, 1], [], []>} : vector<8x32xf32>, vector<32x128xf32>, vector<8x128xf32> -> vector<8x128xf32>
    %11 = arith.addf %9, %10 : vector<8x128xf32>
    %12 = arith.negf %11 : vector<8x128xf32>
    %13 = math.exp %12 : vector<8x128xf32>
    %cst_10 = arith.constant 1.000000e+00 : f32
    %14 = vector.broadcast %cst_10 : f32 to vector<8x128xf32>
    %15 = arith.addf %14, %13 : vector<8x128xf32>
    %16 = arith.divf %14, %15 : vector<8x128xf32>
    %17 = math.tanh %11 : vector<8x128xf32>
    %18 = vector.extract_strided_slice %16 {offsets = [0, 0], sizes = [8, 32], strides = [1, 1]} : vector<8x128xf32> to vector<8x32xf32>
    %19 = vector.extract_strided_slice %16 {offsets = [0, 32], sizes = [8, 32], strides = [1, 1]} : vector<8x128xf32> to vector<8x32xf32>
    %20 = vector.extract_strided_slice %17 {offsets = [0, 64], sizes = [8, 32], strides = [1, 1]} : vector<8x128xf32> to vector<8x32xf32>
    %21 = vector.extract_strided_slice %16 {offsets = [0, 96], sizes = [8, 32], strides = [1, 1]} : vector<8x128xf32> to vector<8x32xf32>
    %22 = arith.mulf %19, %8 : vector<8x32xf32>
    %23 = arith.mulf %18, %20 : vector<8x32xf32>
    %24 = arith.addf %22, %23 : vector<8x32xf32>
    %25 = math.tanh %24 : vector<8x32xf32>
    %26 = arith.mulf %21, %25 : vector<8x32xf32>
    %27 = vector.extract_strided_slice %6 {offsets = [8, 0], sizes = [8, 128], strides = [1, 1]} : vector<64x128xf32> to vector<8x128xf32>
    %cst_11 = arith.constant dense<0.000000e+00> : vector<8x128xf32>
    %28 = tpu.matmul %26, %2, %cst_11 {dimension_numbers = #tpu.dot_dimension_numbers<[1], [0], [0], [1], [0, 0, 1, 1], [], []>} : vector<8x32xf32>, vector<32x128xf32>, vector<8x128xf32> -> vector<8x128xf32>
    %29 = arith.addf %27, %28 : vector<8x128xf32>
    %30 = arith.negf %29 : vector<8x128xf32>
    %31 = math.exp %30 : vector<8x128xf32>
    %cst_12 = arith.constant 1.000000e+00 : f32
    %32 = vector.broadcast %cst_12 : f32 to vector<8x128xf32>
    %33 = arith.addf %32, %31 : vector<8x128xf32>
    %34 = arith.divf %32, %33 : vector<8x128xf32>
    %35 = math.tanh %29 : vector<8x128xf32>
    %36 = vector.extract_strided_slice %34 {offsets = [0, 0], sizes = [8, 32], strides = [1, 1]} : vector<8x128xf32> to vector<8x32xf32>
    %37 = vector.extract_strided_slice %34 {offsets = [0, 32], sizes = [8, 32], strides = [1, 1]} : vector<8x128xf32> to vector<8x32xf32>
    %38 = vector.extract_strided_slice %35 {offsets = [0, 64], sizes = [8, 32], strides = [1, 1]} : vector<8x128xf32> to vector<8x32xf32>
    %39 = vector.extract_strided_slice %34 {offsets = [0, 96], sizes = [8, 32], strides = [1, 1]} : vector<8x128xf32> to vector<8x32xf32>
    %40 = arith.mulf %37, %24 : vector<8x32xf32>
    %41 = arith.mulf %36, %38 : vector<8x32xf32>
    %42 = arith.addf %40, %41 : vector<8x32xf32>
    %43 = math.tanh %42 : vector<8x32xf32>
    %44 = arith.mulf %39, %43 : vector<8x32xf32>
    %45 = vector.extract_strided_slice %6 {offsets = [16, 0], sizes = [8, 128], strides = [1, 1]} : vector<64x128xf32> to vector<8x128xf32>
    %cst_13 = arith.constant dense<0.000000e+00> : vector<8x128xf32>
    %46 = tpu.matmul %44, %2, %cst_13 {dimension_numbers = #tpu.dot_dimension_numbers<[1], [0], [0], [1], [0, 0, 1, 1], [], []>} : vector<8x32xf32>, vector<32x128xf32>, vector<8x128xf32> -> vector<8x128xf32>
    %47 = arith.addf %45, %46 : vector<8x128xf32>
    %48 = arith.negf %47 : vector<8x128xf32>
    %49 = math.exp %48 : vector<8x128xf32>
    %cst_14 = arith.constant 1.000000e+00 : f32
    %50 = vector.broadcast %cst_14 : f32 to vector<8x128xf32>
    %51 = arith.addf %50, %49 : vector<8x128xf32>
    %52 = arith.divf %50, %51 : vector<8x128xf32>
    %53 = math.tanh %47 : vector<8x128xf32>
    %54 = vector.extract_strided_slice %52 {offsets = [0, 0], sizes = [8, 32], strides = [1, 1]} : vector<8x128xf32> to vector<8x32xf32>
    %55 = vector.extract_strided_slice %52 {offsets = [0, 32], sizes = [8, 32], strides = [1, 1]} : vector<8x128xf32> to vector<8x32xf32>
    %56 = vector.extract_strided_slice %53 {offsets = [0, 64], sizes = [8, 32], strides = [1, 1]} : vector<8x128xf32> to vector<8x32xf32>
    %57 = vector.extract_strided_slice %52 {offsets = [0, 96], sizes = [8, 32], strides = [1, 1]} : vector<8x128xf32> to vector<8x32xf32>
    %58 = arith.mulf %55, %42 : vector<8x32xf32>
    %59 = arith.mulf %54, %56 : vector<8x32xf32>
    %60 = arith.addf %58, %59 : vector<8x32xf32>
    %61 = math.tanh %60 : vector<8x32xf32>
    %62 = arith.mulf %57, %61 : vector<8x32xf32>
    %63 = vector.extract_strided_slice %6 {offsets = [24, 0], sizes = [8, 128], strides = [1, 1]} : vector<64x128xf32> to vector<8x128xf32>
    %cst_15 = arith.constant dense<0.000000e+00> : vector<8x128xf32>
    %64 = tpu.matmul %62, %2, %cst_15 {dimension_numbers = #tpu.dot_dimension_numbers<[1], [0], [0], [1], [0, 0, 1, 1], [], []>} : vector<8x32xf32>, vector<32x128xf32>, vector<8x128xf32> -> vector<8x128xf32>
    %65 = arith.addf %63, %64 : vector<8x128xf32>
    %66 = arith.negf %65 : vector<8x128xf32>
    %67 = math.exp %66 : vector<8x128xf32>
    %cst_16 = arith.constant 1.000000e+00 : f32
    %68 = vector.broadcast %cst_16 : f32 to vector<8x128xf32>
    %69 = arith.addf %68, %67 : vector<8x128xf32>
    %70 = arith.divf %68, %69 : vector<8x128xf32>
    %71 = math.tanh %65 : vector<8x128xf32>
    %72 = vector.extract_strided_slice %70 {offsets = [0, 0], sizes = [8, 32], strides = [1, 1]} : vector<8x128xf32> to vector<8x32xf32>
    %73 = vector.extract_strided_slice %70 {offsets = [0, 32], sizes = [8, 32], strides = [1, 1]} : vector<8x128xf32> to vector<8x32xf32>
    %74 = vector.extract_strided_slice %71 {offsets = [0, 64], sizes = [8, 32], strides = [1, 1]} : vector<8x128xf32> to vector<8x32xf32>
    %75 = vector.extract_strided_slice %70 {offsets = [0, 96], sizes = [8, 32], strides = [1, 1]} : vector<8x128xf32> to vector<8x32xf32>
    %76 = arith.mulf %73, %60 : vector<8x32xf32>
    %77 = arith.mulf %72, %74 : vector<8x32xf32>
    %78 = arith.addf %76, %77 : vector<8x32xf32>
    %79 = math.tanh %78 : vector<8x32xf32>
    %80 = arith.mulf %75, %79 : vector<8x32xf32>
    %81 = vector.extract_strided_slice %6 {offsets = [32, 0], sizes = [8, 128], strides = [1, 1]} : vector<64x128xf32> to vector<8x128xf32>
    %cst_17 = arith.constant dense<0.000000e+00> : vector<8x128xf32>
    %82 = tpu.matmul %80, %2, %cst_17 {dimension_numbers = #tpu.dot_dimension_numbers<[1], [0], [0], [1], [0, 0, 1, 1], [], []>} : vector<8x32xf32>, vector<32x128xf32>, vector<8x128xf32> -> vector<8x128xf32>
    %83 = arith.addf %81, %82 : vector<8x128xf32>
    %84 = arith.negf %83 : vector<8x128xf32>
    %85 = math.exp %84 : vector<8x128xf32>
    %cst_18 = arith.constant 1.000000e+00 : f32
    %86 = vector.broadcast %cst_18 : f32 to vector<8x128xf32>
    %87 = arith.addf %86, %85 : vector<8x128xf32>
    %88 = arith.divf %86, %87 : vector<8x128xf32>
    %89 = math.tanh %83 : vector<8x128xf32>
    %90 = vector.extract_strided_slice %88 {offsets = [0, 0], sizes = [8, 32], strides = [1, 1]} : vector<8x128xf32> to vector<8x32xf32>
    %91 = vector.extract_strided_slice %88 {offsets = [0, 32], sizes = [8, 32], strides = [1, 1]} : vector<8x128xf32> to vector<8x32xf32>
    %92 = vector.extract_strided_slice %89 {offsets = [0, 64], sizes = [8, 32], strides = [1, 1]} : vector<8x128xf32> to vector<8x32xf32>
    %93 = vector.extract_strided_slice %88 {offsets = [0, 96], sizes = [8, 32], strides = [1, 1]} : vector<8x128xf32> to vector<8x32xf32>
    %94 = arith.mulf %91, %78 : vector<8x32xf32>
    %95 = arith.mulf %90, %92 : vector<8x32xf32>
    %96 = arith.addf %94, %95 : vector<8x32xf32>
    %97 = math.tanh %96 : vector<8x32xf32>
    %98 = arith.mulf %93, %97 : vector<8x32xf32>
    %99 = vector.extract_strided_slice %6 {offsets = [40, 0], sizes = [8, 128], strides = [1, 1]} : vector<64x128xf32> to vector<8x128xf32>
    %cst_19 = arith.constant dense<0.000000e+00> : vector<8x128xf32>
    %100 = tpu.matmul %98, %2, %cst_19 {dimension_numbers = #tpu.dot_dimension_numbers<[1], [0], [0], [1], [0, 0, 1, 1], [], []>} : vector<8x32xf32>, vector<32x128xf32>, vector<8x128xf32> -> vector<8x128xf32>
    %101 = arith.addf %99, %100 : vector<8x128xf32>
    %102 = arith.negf %101 : vector<8x128xf32>
    %103 = math.exp %102 : vector<8x128xf32>
    %cst_20 = arith.constant 1.000000e+00 : f32
    %104 = vector.broadcast %cst_20 : f32 to vector<8x128xf32>
    %105 = arith.addf %104, %103 : vector<8x128xf32>
    %106 = arith.divf %104, %105 : vector<8x128xf32>
    %107 = math.tanh %101 : vector<8x128xf32>
    %108 = vector.extract_strided_slice %106 {offsets = [0, 0], sizes = [8, 32], strides = [1, 1]} : vector<8x128xf32> to vector<8x32xf32>
    %109 = vector.extract_strided_slice %106 {offsets = [0, 32], sizes = [8, 32], strides = [1, 1]} : vector<8x128xf32> to vector<8x32xf32>
    %110 = vector.extract_strided_slice %107 {offsets = [0, 64], sizes = [8, 32], strides = [1, 1]} : vector<8x128xf32> to vector<8x32xf32>
    %111 = vector.extract_strided_slice %106 {offsets = [0, 96], sizes = [8, 32], strides = [1, 1]} : vector<8x128xf32> to vector<8x32xf32>
    %112 = arith.mulf %109, %96 : vector<8x32xf32>
    %113 = arith.mulf %108, %110 : vector<8x32xf32>
    %114 = arith.addf %112, %113 : vector<8x32xf32>
    %115 = math.tanh %114 : vector<8x32xf32>
    %116 = arith.mulf %111, %115 : vector<8x32xf32>
    %117 = vector.extract_strided_slice %6 {offsets = [48, 0], sizes = [8, 128], strides = [1, 1]} : vector<64x128xf32> to vector<8x128xf32>
    %cst_21 = arith.constant dense<0.000000e+00> : vector<8x128xf32>
    %118 = tpu.matmul %116, %2, %cst_21 {dimension_numbers = #tpu.dot_dimension_numbers<[1], [0], [0], [1], [0, 0, 1, 1], [], []>} : vector<8x32xf32>, vector<32x128xf32>, vector<8x128xf32> -> vector<8x128xf32>
    %119 = arith.addf %117, %118 : vector<8x128xf32>
    %120 = arith.negf %119 : vector<8x128xf32>
    %121 = math.exp %120 : vector<8x128xf32>
    %cst_22 = arith.constant 1.000000e+00 : f32
    %122 = vector.broadcast %cst_22 : f32 to vector<8x128xf32>
    %123 = arith.addf %122, %121 : vector<8x128xf32>
    %124 = arith.divf %122, %123 : vector<8x128xf32>
    %125 = math.tanh %119 : vector<8x128xf32>
    %126 = vector.extract_strided_slice %124 {offsets = [0, 0], sizes = [8, 32], strides = [1, 1]} : vector<8x128xf32> to vector<8x32xf32>
    %127 = vector.extract_strided_slice %124 {offsets = [0, 32], sizes = [8, 32], strides = [1, 1]} : vector<8x128xf32> to vector<8x32xf32>
    %128 = vector.extract_strided_slice %125 {offsets = [0, 64], sizes = [8, 32], strides = [1, 1]} : vector<8x128xf32> to vector<8x32xf32>
    %129 = vector.extract_strided_slice %124 {offsets = [0, 96], sizes = [8, 32], strides = [1, 1]} : vector<8x128xf32> to vector<8x32xf32>
    %130 = arith.mulf %127, %114 : vector<8x32xf32>
    %131 = arith.mulf %126, %128 : vector<8x32xf32>
    %132 = arith.addf %130, %131 : vector<8x32xf32>
    %133 = math.tanh %132 : vector<8x32xf32>
    %134 = arith.mulf %129, %133 : vector<8x32xf32>
    %135 = vector.extract_strided_slice %6 {offsets = [56, 0], sizes = [8, 128], strides = [1, 1]} : vector<64x128xf32> to vector<8x128xf32>
    %cst_23 = arith.constant dense<0.000000e+00> : vector<8x128xf32>
    %136 = tpu.matmul %134, %2, %cst_23 {dimension_numbers = #tpu.dot_dimension_numbers<[1], [0], [0], [1], [0, 0, 1, 1], [], []>} : vector<8x32xf32>, vector<32x128xf32>, vector<8x128xf32> -> vector<8x128xf32>
    %137 = arith.addf %135, %136 : vector<8x128xf32>
    %138 = arith.negf %137 : vector<8x128xf32>
    %139 = math.exp %138 : vector<8x128xf32>
    %cst_24 = arith.constant 1.000000e+00 : f32
    %140 = vector.broadcast %cst_24 : f32 to vector<8x128xf32>
    %141 = arith.addf %140, %139 : vector<8x128xf32>
    %142 = arith.divf %140, %141 : vector<8x128xf32>
    %143 = math.tanh %137 : vector<8x128xf32>
    %144 = vector.extract_strided_slice %142 {offsets = [0, 0], sizes = [8, 32], strides = [1, 1]} : vector<8x128xf32> to vector<8x32xf32>
    %145 = vector.extract_strided_slice %142 {offsets = [0, 32], sizes = [8, 32], strides = [1, 1]} : vector<8x128xf32> to vector<8x32xf32>
    %146 = vector.extract_strided_slice %143 {offsets = [0, 64], sizes = [8, 32], strides = [1, 1]} : vector<8x128xf32> to vector<8x32xf32>
    %147 = vector.extract_strided_slice %142 {offsets = [0, 96], sizes = [8, 32], strides = [1, 1]} : vector<8x128xf32> to vector<8x32xf32>
    %148 = arith.mulf %145, %132 : vector<8x32xf32>
    %149 = arith.mulf %144, %146 : vector<8x32xf32>
    %150 = arith.addf %148, %149 : vector<8x32xf32>
    %151 = math.tanh %150 : vector<8x32xf32>
    %152 = arith.mulf %147, %151 : vector<8x32xf32>
    %153 = tpu.concatenate %26, %44, %62, %80, %98, %116, %134, %152 in 0 : vector<8x32xf32>, vector<8x32xf32>, vector<8x32xf32>, vector<8x32xf32>, vector<8x32xf32>, vector<8x32xf32>, vector<8x32xf32>, vector<8x32xf32> -> vector<64x32xf32>
    %c0_25 = arith.constant 0 : index
    %c0_26 = arith.constant 0 : index
    %154 = vector.load %arg4[%c0_25, %c0_26] : memref<32x128xf32, #tpu.memory_space<vmem>>, vector<32x128xf32>
    %c0_27 = arith.constant 0 : index
    %c0_28 = arith.constant 0 : index
    %155 = vector.load %arg5[%c0_27, %c0_28] : memref<32x128xf32, #tpu.memory_space<vmem>>, vector<32x128xf32>
    %c0_29 = arith.constant 0 : index
    %c0_30 = arith.constant 0 : index
    %156 = vector.load %arg6[%c0_29, %c0_30] : memref<1x128xf32, #tpu.memory_space<vmem>>, vector<1x128xf32>
    %cst_31 = arith.constant dense<0.000000e+00> : vector<64x128xf32>
    %157 = tpu.matmul %153, %154, %cst_31 {dimension_numbers = #tpu.dot_dimension_numbers<[1], [0], [0], [1], [0, 0, 1, 1], [], []>} : vector<64x32xf32>, vector<32x128xf32>, vector<64x128xf32> -> vector<64x128xf32>
    %158 = vector.broadcast %156 : vector<1x128xf32> to vector<64x128xf32>
    %159 = arith.addf %157, %158 : vector<64x128xf32>
    %cst_32 = arith.constant 0.000000e+00 : f32
    %160 = vector.broadcast %cst_32 : f32 to vector<8x32xf32>
    %cst_33 = arith.constant 0.000000e+00 : f32
    %161 = vector.broadcast %cst_33 : f32 to vector<8x32xf32>
    %162 = vector.extract_strided_slice %159 {offsets = [0, 0], sizes = [8, 128], strides = [1, 1]} : vector<64x128xf32> to vector<8x128xf32>
    %cst_34 = arith.constant dense<0.000000e+00> : vector<8x128xf32>
    %163 = tpu.matmul %160, %155, %cst_34 {dimension_numbers = #tpu.dot_dimension_numbers<[1], [0], [0], [1], [0, 0, 1, 1], [], []>} : vector<8x32xf32>, vector<32x128xf32>, vector<8x128xf32> -> vector<8x128xf32>
    %164 = arith.addf %162, %163 : vector<8x128xf32>
    %165 = arith.negf %164 : vector<8x128xf32>
    %166 = math.exp %165 : vector<8x128xf32>
    %cst_35 = arith.constant 1.000000e+00 : f32
    %167 = vector.broadcast %cst_35 : f32 to vector<8x128xf32>
    %168 = arith.addf %167, %166 : vector<8x128xf32>
    %169 = arith.divf %167, %168 : vector<8x128xf32>
    %170 = math.tanh %164 : vector<8x128xf32>
    %171 = vector.extract_strided_slice %169 {offsets = [0, 0], sizes = [8, 32], strides = [1, 1]} : vector<8x128xf32> to vector<8x32xf32>
    %172 = vector.extract_strided_slice %169 {offsets = [0, 32], sizes = [8, 32], strides = [1, 1]} : vector<8x128xf32> to vector<8x32xf32>
    %173 = vector.extract_strided_slice %170 {offsets = [0, 64], sizes = [8, 32], strides = [1, 1]} : vector<8x128xf32> to vector<8x32xf32>
    %174 = vector.extract_strided_slice %169 {offsets = [0, 96], sizes = [8, 32], strides = [1, 1]} : vector<8x128xf32> to vector<8x32xf32>
    %175 = arith.mulf %172, %161 : vector<8x32xf32>
    %176 = arith.mulf %171, %173 : vector<8x32xf32>
    %177 = arith.addf %175, %176 : vector<8x32xf32>
    %178 = math.tanh %177 : vector<8x32xf32>
    %179 = arith.mulf %174, %178 : vector<8x32xf32>
    %180 = vector.extract_strided_slice %159 {offsets = [8, 0], sizes = [8, 128], strides = [1, 1]} : vector<64x128xf32> to vector<8x128xf32>
    %cst_36 = arith.constant dense<0.000000e+00> : vector<8x128xf32>
    %181 = tpu.matmul %179, %155, %cst_36 {dimension_numbers = #tpu.dot_dimension_numbers<[1], [0], [0], [1], [0, 0, 1, 1], [], []>} : vector<8x32xf32>, vector<32x128xf32>, vector<8x128xf32> -> vector<8x128xf32>
    %182 = arith.addf %180, %181 : vector<8x128xf32>
    %183 = arith.negf %182 : vector<8x128xf32>
    %184 = math.exp %183 : vector<8x128xf32>
    %cst_37 = arith.constant 1.000000e+00 : f32
    %185 = vector.broadcast %cst_37 : f32 to vector<8x128xf32>
    %186 = arith.addf %185, %184 : vector<8x128xf32>
    %187 = arith.divf %185, %186 : vector<8x128xf32>
    %188 = math.tanh %182 : vector<8x128xf32>
    %189 = vector.extract_strided_slice %187 {offsets = [0, 0], sizes = [8, 32], strides = [1, 1]} : vector<8x128xf32> to vector<8x32xf32>
    %190 = vector.extract_strided_slice %187 {offsets = [0, 32], sizes = [8, 32], strides = [1, 1]} : vector<8x128xf32> to vector<8x32xf32>
    %191 = vector.extract_strided_slice %188 {offsets = [0, 64], sizes = [8, 32], strides = [1, 1]} : vector<8x128xf32> to vector<8x32xf32>
    %192 = vector.extract_strided_slice %187 {offsets = [0, 96], sizes = [8, 32], strides = [1, 1]} : vector<8x128xf32> to vector<8x32xf32>
    %193 = arith.mulf %190, %177 : vector<8x32xf32>
    %194 = arith.mulf %189, %191 : vector<8x32xf32>
    %195 = arith.addf %193, %194 : vector<8x32xf32>
    %196 = math.tanh %195 : vector<8x32xf32>
    %197 = arith.mulf %192, %196 : vector<8x32xf32>
    %198 = vector.extract_strided_slice %159 {offsets = [16, 0], sizes = [8, 128], strides = [1, 1]} : vector<64x128xf32> to vector<8x128xf32>
    %cst_38 = arith.constant dense<0.000000e+00> : vector<8x128xf32>
    %199 = tpu.matmul %197, %155, %cst_38 {dimension_numbers = #tpu.dot_dimension_numbers<[1], [0], [0], [1], [0, 0, 1, 1], [], []>} : vector<8x32xf32>, vector<32x128xf32>, vector<8x128xf32> -> vector<8x128xf32>
    %200 = arith.addf %198, %199 : vector<8x128xf32>
    %201 = arith.negf %200 : vector<8x128xf32>
    %202 = math.exp %201 : vector<8x128xf32>
    %cst_39 = arith.constant 1.000000e+00 : f32
    %203 = vector.broadcast %cst_39 : f32 to vector<8x128xf32>
    %204 = arith.addf %203, %202 : vector<8x128xf32>
    %205 = arith.divf %203, %204 : vector<8x128xf32>
    %206 = math.tanh %200 : vector<8x128xf32>
    %207 = vector.extract_strided_slice %205 {offsets = [0, 0], sizes = [8, 32], strides = [1, 1]} : vector<8x128xf32> to vector<8x32xf32>
    %208 = vector.extract_strided_slice %205 {offsets = [0, 32], sizes = [8, 32], strides = [1, 1]} : vector<8x128xf32> to vector<8x32xf32>
    %209 = vector.extract_strided_slice %206 {offsets = [0, 64], sizes = [8, 32], strides = [1, 1]} : vector<8x128xf32> to vector<8x32xf32>
    %210 = vector.extract_strided_slice %205 {offsets = [0, 96], sizes = [8, 32], strides = [1, 1]} : vector<8x128xf32> to vector<8x32xf32>
    %211 = arith.mulf %208, %195 : vector<8x32xf32>
    %212 = arith.mulf %207, %209 : vector<8x32xf32>
    %213 = arith.addf %211, %212 : vector<8x32xf32>
    %214 = math.tanh %213 : vector<8x32xf32>
    %215 = arith.mulf %210, %214 : vector<8x32xf32>
    %216 = vector.extract_strided_slice %159 {offsets = [24, 0], sizes = [8, 128], strides = [1, 1]} : vector<64x128xf32> to vector<8x128xf32>
    %cst_40 = arith.constant dense<0.000000e+00> : vector<8x128xf32>
    %217 = tpu.matmul %215, %155, %cst_40 {dimension_numbers = #tpu.dot_dimension_numbers<[1], [0], [0], [1], [0, 0, 1, 1], [], []>} : vector<8x32xf32>, vector<32x128xf32>, vector<8x128xf32> -> vector<8x128xf32>
    %218 = arith.addf %216, %217 : vector<8x128xf32>
    %219 = arith.negf %218 : vector<8x128xf32>
    %220 = math.exp %219 : vector<8x128xf32>
    %cst_41 = arith.constant 1.000000e+00 : f32
    %221 = vector.broadcast %cst_41 : f32 to vector<8x128xf32>
    %222 = arith.addf %221, %220 : vector<8x128xf32>
    %223 = arith.divf %221, %222 : vector<8x128xf32>
    %224 = math.tanh %218 : vector<8x128xf32>
    %225 = vector.extract_strided_slice %223 {offsets = [0, 0], sizes = [8, 32], strides = [1, 1]} : vector<8x128xf32> to vector<8x32xf32>
    %226 = vector.extract_strided_slice %223 {offsets = [0, 32], sizes = [8, 32], strides = [1, 1]} : vector<8x128xf32> to vector<8x32xf32>
    %227 = vector.extract_strided_slice %224 {offsets = [0, 64], sizes = [8, 32], strides = [1, 1]} : vector<8x128xf32> to vector<8x32xf32>
    %228 = vector.extract_strided_slice %223 {offsets = [0, 96], sizes = [8, 32], strides = [1, 1]} : vector<8x128xf32> to vector<8x32xf32>
    %229 = arith.mulf %226, %213 : vector<8x32xf32>
    %230 = arith.mulf %225, %227 : vector<8x32xf32>
    %231 = arith.addf %229, %230 : vector<8x32xf32>
    %232 = math.tanh %231 : vector<8x32xf32>
    %233 = arith.mulf %228, %232 : vector<8x32xf32>
    %234 = vector.extract_strided_slice %159 {offsets = [32, 0], sizes = [8, 128], strides = [1, 1]} : vector<64x128xf32> to vector<8x128xf32>
    %cst_42 = arith.constant dense<0.000000e+00> : vector<8x128xf32>
    %235 = tpu.matmul %233, %155, %cst_42 {dimension_numbers = #tpu.dot_dimension_numbers<[1], [0], [0], [1], [0, 0, 1, 1], [], []>} : vector<8x32xf32>, vector<32x128xf32>, vector<8x128xf32> -> vector<8x128xf32>
    %236 = arith.addf %234, %235 : vector<8x128xf32>
    %237 = arith.negf %236 : vector<8x128xf32>
    %238 = math.exp %237 : vector<8x128xf32>
    %cst_43 = arith.constant 1.000000e+00 : f32
    %239 = vector.broadcast %cst_43 : f32 to vector<8x128xf32>
    %240 = arith.addf %239, %238 : vector<8x128xf32>
    %241 = arith.divf %239, %240 : vector<8x128xf32>
    %242 = math.tanh %236 : vector<8x128xf32>
    %243 = vector.extract_strided_slice %241 {offsets = [0, 0], sizes = [8, 32], strides = [1, 1]} : vector<8x128xf32> to vector<8x32xf32>
    %244 = vector.extract_strided_slice %241 {offsets = [0, 32], sizes = [8, 32], strides = [1, 1]} : vector<8x128xf32> to vector<8x32xf32>
    %245 = vector.extract_strided_slice %242 {offsets = [0, 64], sizes = [8, 32], strides = [1, 1]} : vector<8x128xf32> to vector<8x32xf32>
    %246 = vector.extract_strided_slice %241 {offsets = [0, 96], sizes = [8, 32], strides = [1, 1]} : vector<8x128xf32> to vector<8x32xf32>
    %247 = arith.mulf %244, %231 : vector<8x32xf32>
    %248 = arith.mulf %243, %245 : vector<8x32xf32>
    %249 = arith.addf %247, %248 : vector<8x32xf32>
    %250 = math.tanh %249 : vector<8x32xf32>
    %251 = arith.mulf %246, %250 : vector<8x32xf32>
    %252 = vector.extract_strided_slice %159 {offsets = [40, 0], sizes = [8, 128], strides = [1, 1]} : vector<64x128xf32> to vector<8x128xf32>
    %cst_44 = arith.constant dense<0.000000e+00> : vector<8x128xf32>
    %253 = tpu.matmul %251, %155, %cst_44 {dimension_numbers = #tpu.dot_dimension_numbers<[1], [0], [0], [1], [0, 0, 1, 1], [], []>} : vector<8x32xf32>, vector<32x128xf32>, vector<8x128xf32> -> vector<8x128xf32>
    %254 = arith.addf %252, %253 : vector<8x128xf32>
    %255 = arith.negf %254 : vector<8x128xf32>
    %256 = math.exp %255 : vector<8x128xf32>
    %cst_45 = arith.constant 1.000000e+00 : f32
    %257 = vector.broadcast %cst_45 : f32 to vector<8x128xf32>
    %258 = arith.addf %257, %256 : vector<8x128xf32>
    %259 = arith.divf %257, %258 : vector<8x128xf32>
    %260 = math.tanh %254 : vector<8x128xf32>
    %261 = vector.extract_strided_slice %259 {offsets = [0, 0], sizes = [8, 32], strides = [1, 1]} : vector<8x128xf32> to vector<8x32xf32>
    %262 = vector.extract_strided_slice %259 {offsets = [0, 32], sizes = [8, 32], strides = [1, 1]} : vector<8x128xf32> to vector<8x32xf32>
    %263 = vector.extract_strided_slice %260 {offsets = [0, 64], sizes = [8, 32], strides = [1, 1]} : vector<8x128xf32> to vector<8x32xf32>
    %264 = vector.extract_strided_slice %259 {offsets = [0, 96], sizes = [8, 32], strides = [1, 1]} : vector<8x128xf32> to vector<8x32xf32>
    %265 = arith.mulf %262, %249 : vector<8x32xf32>
    %266 = arith.mulf %261, %263 : vector<8x32xf32>
    %267 = arith.addf %265, %266 : vector<8x32xf32>
    %268 = math.tanh %267 : vector<8x32xf32>
    %269 = arith.mulf %264, %268 : vector<8x32xf32>
    %270 = vector.extract_strided_slice %159 {offsets = [48, 0], sizes = [8, 128], strides = [1, 1]} : vector<64x128xf32> to vector<8x128xf32>
    %cst_46 = arith.constant dense<0.000000e+00> : vector<8x128xf32>
    %271 = tpu.matmul %269, %155, %cst_46 {dimension_numbers = #tpu.dot_dimension_numbers<[1], [0], [0], [1], [0, 0, 1, 1], [], []>} : vector<8x32xf32>, vector<32x128xf32>, vector<8x128xf32> -> vector<8x128xf32>
    %272 = arith.addf %270, %271 : vector<8x128xf32>
    %273 = arith.negf %272 : vector<8x128xf32>
    %274 = math.exp %273 : vector<8x128xf32>
    %cst_47 = arith.constant 1.000000e+00 : f32
    %275 = vector.broadcast %cst_47 : f32 to vector<8x128xf32>
    %276 = arith.addf %275, %274 : vector<8x128xf32>
    %277 = arith.divf %275, %276 : vector<8x128xf32>
    %278 = math.tanh %272 : vector<8x128xf32>
    %279 = vector.extract_strided_slice %277 {offsets = [0, 0], sizes = [8, 32], strides = [1, 1]} : vector<8x128xf32> to vector<8x32xf32>
    %280 = vector.extract_strided_slice %277 {offsets = [0, 32], sizes = [8, 32], strides = [1, 1]} : vector<8x128xf32> to vector<8x32xf32>
    %281 = vector.extract_strided_slice %278 {offsets = [0, 64], sizes = [8, 32], strides = [1, 1]} : vector<8x128xf32> to vector<8x32xf32>
    %282 = vector.extract_strided_slice %277 {offsets = [0, 96], sizes = [8, 32], strides = [1, 1]} : vector<8x128xf32> to vector<8x32xf32>
    %283 = arith.mulf %280, %267 : vector<8x32xf32>
    %284 = arith.mulf %279, %281 : vector<8x32xf32>
    %285 = arith.addf %283, %284 : vector<8x32xf32>
    %286 = math.tanh %285 : vector<8x32xf32>
    %287 = arith.mulf %282, %286 : vector<8x32xf32>
    %288 = vector.extract_strided_slice %159 {offsets = [56, 0], sizes = [8, 128], strides = [1, 1]} : vector<64x128xf32> to vector<8x128xf32>
    %cst_48 = arith.constant dense<0.000000e+00> : vector<8x128xf32>
    %289 = tpu.matmul %287, %155, %cst_48 {dimension_numbers = #tpu.dot_dimension_numbers<[1], [0], [0], [1], [0, 0, 1, 1], [], []>} : vector<8x32xf32>, vector<32x128xf32>, vector<8x128xf32> -> vector<8x128xf32>
    %290 = arith.addf %288, %289 : vector<8x128xf32>
    %291 = arith.negf %290 : vector<8x128xf32>
    %292 = math.exp %291 : vector<8x128xf32>
    %cst_49 = arith.constant 1.000000e+00 : f32
    %293 = vector.broadcast %cst_49 : f32 to vector<8x128xf32>
    %294 = arith.addf %293, %292 : vector<8x128xf32>
    %295 = arith.divf %293, %294 : vector<8x128xf32>
    %296 = math.tanh %290 : vector<8x128xf32>
    %297 = vector.extract_strided_slice %295 {offsets = [0, 0], sizes = [8, 32], strides = [1, 1]} : vector<8x128xf32> to vector<8x32xf32>
    %298 = vector.extract_strided_slice %295 {offsets = [0, 32], sizes = [8, 32], strides = [1, 1]} : vector<8x128xf32> to vector<8x32xf32>
    %299 = vector.extract_strided_slice %296 {offsets = [0, 64], sizes = [8, 32], strides = [1, 1]} : vector<8x128xf32> to vector<8x32xf32>
    %300 = vector.extract_strided_slice %295 {offsets = [0, 96], sizes = [8, 32], strides = [1, 1]} : vector<8x128xf32> to vector<8x32xf32>
    %301 = arith.mulf %298, %285 : vector<8x32xf32>
    %302 = arith.mulf %297, %299 : vector<8x32xf32>
    %303 = arith.addf %301, %302 : vector<8x32xf32>
    %304 = math.tanh %303 : vector<8x32xf32>
    %305 = arith.mulf %300, %304 : vector<8x32xf32>
    %306 = tpu.concatenate %179, %197, %215, %233, %251, %269, %287, %305 in 0 : vector<8x32xf32>, vector<8x32xf32>, vector<8x32xf32>, vector<8x32xf32>, vector<8x32xf32>, vector<8x32xf32>, vector<8x32xf32>, vector<8x32xf32> -> vector<64x32xf32>
    %c0_50 = arith.constant 0 : index
    %c0_51 = arith.constant 0 : index
    %307 = vector.load %arg7[%c0_50, %c0_51] : memref<32x128xf32, #tpu.memory_space<vmem>>, vector<32x128xf32>
    %cst_52 = arith.constant dense<0.000000e+00> : vector<64x128xf32>
    %308 = tpu.matmul %306, %307, %cst_52 {dimension_numbers = #tpu.dot_dimension_numbers<[1], [0], [0], [1], [0, 0, 1, 1], [], []>} : vector<64x32xf32>, vector<32x128xf32>, vector<64x128xf32> -> vector<64x128xf32>
    %c0_53 = arith.constant 0 : index
    %c0_54 = arith.constant 0 : index
    %309 = vector.load %arg8[%c0_53, %c0_54] : memref<1x128xf32, #tpu.memory_space<vmem>>, vector<1x128xf32>
    %310 = vector.broadcast %309 : vector<1x128xf32> to vector<64x128xf32>
    %311 = arith.addf %308, %310 : vector<64x128xf32>
    %c0_55 = arith.constant 0 : index
    %c0_56 = arith.constant 0 : index
    %312 = vector.load %arg9[%c0_55, %c0_56] : memref<64x128xf32, #tpu.memory_space<vmem>>, vector<64x128xf32>
    tpu.vector_store %arg9[%c0_55, %c0_56], %311 {strides = array<i32>} : memref<64x128xf32, #tpu.memory_space<vmem>>, vector<64x128xf32>,
    return
  }
}

</mosaic_0001>

<bundles_post_ra>
// kernel: lstm_forward.1
= control target key start
LH: loop header
LB: loop body
LE: loop exit
PB: predicated region body
PF: predicated region fallthrough
CT: control target
= control target key end

     0   :  { %14 = vsyncpa [#allocation3], 0  ;;  %s2048_s0 = inlined_call_operand.vmem [shape: f32[64,16], index: 0, kind: input, shape index: {}]   ;;  %s2049_s1 = inlined_call_operand.hbm [shape: f32[16,128], index: 1, kind: input, shape index: {}]   ;;  %s2050_s2 = inlined_call_operand.vmem [shape: f32[32,128], index: 2, kind: input, shape index: {}]   ;;  %s2051_s3 = inlined_call_operand.hbm [shape: f32[1,128], index: 3, kind: input, shape index: {}]   ;;  %s2052_s4 = inlined_call_operand.vmem [shape: f32[32,128], index: 4, kind: input, shape index: {}]   ;;  %s2053_s5 = inlined_call_operand.vmem [shape: f32[32,128], index: 5, kind: input, shape index: {}]   ;;  %s2054_s6 = inlined_call_operand.vmem [shape: f32[1,128], index: 6, kind: input, shape index: {}]   ;;  %s2055_s7 = inlined_call_operand.hbm [shape: f32[32,128], index: 7, kind: input, shape index: {}]   ;;  %s2056_s8 = inlined_call_operand.hbm [shape: f32[1,128], index: 8, kind: input, shape index: {}]   ;;  %s2057_s9 = inlined_call_operand.vmem [shape: f32[64,128], index: 9, kind: output, shape index: {}]  }
   0x1   :  { %15 = vsyncpa [#allocation5], 0  ;;  %s39_s11 = sshll.u32 %s2051_s3, 4  ;;  %s40_s11 = int_to_ptr.hbm [resolvable:$true] %s39_s11 }
   0x2   :  { %16 = vsyncpa [#allocation8], 0  ;;  %s1608_s12 = smov [#allocation4]   ;;  %s23_s16 = sshll.u32 %s2049_s1, 4  ;;  %s24_s16 = int_to_ptr.hbm [resolvable:$true] %s23_s16 }
   0x3   :  { %s41_s13 = sshll.u32 %s1608_s12, 4  ;;  %s1609_s17 = smov [#allocation2]   ;;  %s42_s13 = int_to_ptr.vmem [resolvable:$true] %s41_s13 }
   0x4   :  { %44 = dma.hbm_to_vmem [thread:$0]  %s40_s11, 16, %s42_s13, [#allocation5]  }
   0x5   :  { %s25_s18 = sshll.u32 %s1609_s17, 4  ;;  %s1610_s19 = smov 128   ;;  %s26_s18 = int_to_ptr.vmem [resolvable:$true] %s25_s18 }
   0x6   :  { %s1611_s20 = smov 8   ;;  %s55_s3 = sshll.u32 %s2055_s7, 4  ;;  %s56_s3 = int_to_ptr.hbm [resolvable:$true] %s55_s3 }
   0x7   :  { %31 = dma.hbm_to_vmem [thread:$0]  %s24_s16, 256, %s26_s18, [#allocation3], %s1610_s19, %s1610_s19, %s1611_s20  }
   0x8   :  { %s1612_s23 = smov [#allocation6]   ;;  %s69_s1 = sshll.u32 %s2056_s8, 4  ;;  %s70_s1 = int_to_ptr.hbm [resolvable:$true] %s69_s1 }
   0x9   :  { %s57_s24 = sshll.u32 %s1612_s23, 4  ;;  %s1613_s27 = smov [#allocation7]   ;;  %s58_s24 = int_to_ptr.vmem [resolvable:$true] %s57_s24 }
   0xa   :  { %63 = dma.hbm_to_vmem [thread:$0]  %s56_s3, 512, %s58_s24, [#allocation5], %s1610_s19, %s1610_s19, %s1611_s20  }
   0xb   :  { %s71_s28 = sshll.u32 %s1613_s27, 4  ;;  %s72_s28 = int_to_ptr.vmem [resolvable:$true] %s71_s28 }
   0xc   :  { %74 = dma.hbm_to_vmem [thread:$0]  %s70_s1, 16, %s72_s28, [#allocation8]  }
   0xd   :  { %1602 = dma.done.wait [#allocation3], 256  }
   0xe   :  { %1603 = vsyncadd [#allocation3], 4294967040 }
   0xf   :  { %1604 = dma.done.wait [#allocation5], 528  }
  0x10   :  { %1605 = vsyncadd [#allocation5], 4294966768 }
  0x11   :  { %1606 = dma.done.wait [#allocation8], 16  }
  0x12   :  { %1607 = vsyncadd [#allocation8], 4294967280  ;;  %v1682_v0 = vld [vmem:[%s2050_s2 + $0x18] sm:$0xff]  ;;  %v100_v1 = vld [vmem:[#allocation2 + $0x8] sm:$0xff]  ;;  %vm109_vm0 = vcmask 130048   ;;  %v1614_v7 = vmov 0.0  }
  0x13   :  { %v1687_v2 = vld [vmem:[%s2050_s2 + $0x10] sm:$0xff]  ;;  %191 = vmatpush.msra.mxu1 %v1682_v0  ;;  %148 = vmatpush.msra.mxu0 %v100_v1  ;;  %v99_v3 = vld [vmem:[#allocation2] sm:$0xff]  ;;  %v1696_v5 = vld [vmem:[%s2050_s2 + $0x8] sm:$0xff]  ;;  %s1616_s16 = smov 32   ;;  %vm175_vm5 = vcmask 261120  }
  0x14   :  { %v91_v4 = vld [vmem:[%s2048_s0] sm:$0xff]  ;;  %254 = vmatpush.msra.mxu2 %v1682_v0  ;;  %317 = vmatpush.msra.mxu3 %v1682_v0  ;;  %v1732_v8 = vld [vmem:[#allocation4] ss:$0 sm:$0xff]  ;;  %v92_v35 = vld [vmem:[%s2048_s0 + $0x8] sm:$0xff] }
  0x15   :  { %192 = vmatpush.msra.mxu1 %v1687_v2  ;;  %149 = vmatpush.msra.mxu0 %v99_v3  ;;  %v1705_v6 = vld [vmem:[%s2050_s2] sm:$0xff]  ;;  %s1615_s2 = smov 64   ;;  %v93_v63 = vld [vmem:[%s2048_s0 + $0x10] sm:$0xff] }
  0x16   :  { %1304 = vmatmul.msk.f32.vlgmr.msra.gmra.mxu0 %vm109_vm0, %v91_v4  ;;  %255 = vmatpush.msra.mxu2 %v1687_v2 }
  0x17   :  { %193 = vmatpush.msra.mxu1 %v1696_v5  ;;  %318 = vmatpush.msra.mxu3 %v1687_v2 }
  0x18   :  { %256 = vmatpush.msra.mxu2 %v1696_v5 }
  0x19   :  { %194 = vmatpush.msra.mxu1 %v1705_v6  ;;  %319 = vmatpush.msra.mxu3 %v1696_v5 }
  0x1a   :  { %195 = vmatmul.f32.vlgmr.msra.gmra.mxu1 %v1614_v7  ;;  %257 = vmatpush.msra.mxu2 %v1705_v6 }
  0x1b   :  { %320 = vmatpush.msra.mxu3 %v1705_v6  ;;  %380 = vmatpush.msrb.mxu1 %v1682_v0 }
  0x1c   :  { %443 = vmatpush.msrb.mxu2 %v1682_v0 }
  0x1d   :  { %506 = vmatpush.msrb.mxu3 %v1682_v0  ;;  %381 = vmatpush.msrb.mxu1 %v1687_v2 }
  0x1e   :  { %444 = vmatpush.msrb.mxu2 %v1687_v2  ;;  %1305 = vmatmul.msk.f32.gmra.mxu0 %vm109_vm0, %v92_v35 }
  0x1f   :  { %507 = vmatpush.msrb.mxu3 %v1687_v2  ;;  %382 = vmatpush.msrb.mxu1 %v1696_v5 }
  0x20   :  { %445 = vmatpush.msrb.mxu2 %v1696_v5 }
  0x21   :  { %508 = vmatpush.msrb.mxu3 %v1696_v5  ;;  %383 = vmatpush.msrb.mxu1 %v1705_v6 }
  0x22   :  { %446 = vmatpush.msrb.mxu2 %v1705_v6 }
  0x23   :  { %509 = vmatpush.msrb.mxu3 %v1705_v6  ;;  %569 = vmatpush.msra.mxu1 %v1682_v0 }
  0x25   :  { %570 = vmatpush.msra.mxu1 %v1687_v2 }
  0x26   :  { %1306 = vmatmul.msk.f32.gmra.mxu0 %vm109_vm0, %v93_v63 }
  0x27   :  { %571 = vmatpush.msra.mxu1 %v1696_v5 }
  0x29   :  { %572 = vmatpush.msra.mxu1 %v1705_v6 }
  0x93   :  { %v151_v9 = vpop.f32.mrf.mxu0 }
  0x94   :  { %v152_v10 = vadd.f32 %v1732_v8, %v151_v9 }
  0x97   :  { %v196_v11 = vpop.f32.mrf.mxu1 }
  0x98   :  { %v199_v12 = vadd.f32 %v196_v11, %v152_v10 }
  0x9a   :  { %1378 = vtanh.f32 %v199_v12  ;;  %v1312_v14 = vmul.f32 -1.442695, %v199_v12 }
  0x9b   :  { %v154_v37 = vpop.f32.mrf.mxu0 }
  0x9c   :  { %1380 = vpow2.f32 %v1312_v14  ;;  %v155_v38 = vadd.f32 %v1732_v8, %v154_v37 }
  0xa0   :  { %v1379_v13 = vpop.eup %1378 }
  0xa1   :  { %222 = vrot.lane.b32.xlu0 %v1379_v13, %s1615_s2 }
  0xa2   :  { %v1381_v15 = vpop.eup %1380 }
  0xa3   :  { %v203_v16 = vadd.f32 1.0, %v1381_v15  ;;  %v157_v1 = vpop.f32.mrf.mxu0 }
  0xa5   :  { %1382 = vrcp.f32 %v203_v16  ;;  %v215_v22 = vand.u32 2147483648, %v203_v16  ;;  %vm209_vm2 = vweird.f32 %v203_v16  ;;  %v213_v23 = vand.u32 2147483647, %v203_v16 }
  0xa7   :  { %v216_v25 = vor.u32 1.1754944e-38, %v215_v22  ;;  %vm214_vm4 = vcmp.eq.f32.partialorder %v213_v23, 8.507059e+37 }
  0xab   :  { %v1383_v17 = vpop.eup %1382 }
  0xac   :  { %v205_v18 = vmul.f32 %v1383_v17, %v203_v16  ;;  %vm210_vm1 = vweird.f32 %v1383_v17 }
  0xad   :  { %vm211_vm3 = vmor %vm209_vm2, %vm210_vm1 }
  0xae   :  { %v206_v19 = vsub.f32 1.0, %v205_v18 }
  0xb0   :  { %v207_v20 = vmul.f32 %v1383_v17, %v206_v19 }
  0xb2   :  { %v208_v21 = vadd.f32 %v1383_v17, %v207_v20 }
  0xb4   :  { %v212_v24 = vsel %vm211_vm3, %v1383_v17, %v208_v21 }
  0xb5   :  { %v217_v27 = vsel %vm214_vm4, %v216_v25, %v212_v24 }
  0xb6   :  { %v220_v29 = vmul.f32 0.0, %v217_v27 }
 0x113   :  { %v223_v26 = vpop.permute.xlu0 %222 }
 0x114   :  { %v225_v28 = vmul.f32 %v223_v26, %v217_v27 }
 0x116   :  { %227 = vrot.lane.b32.xlu0 %v225_v28, %s1616_s16 }
 0x188   :  { %v228_v30 = vpop.permute.xlu0 %227 }
 0x189   :  { %v230_v31 = vadd.f32 %v228_v30, %v220_v29 }
 0x18b   :  { %1384 = vtanh.f32 %v230_v31 }
 0x191   :  { %v1385_v32 = vpop.eup %1384 }
 0x192   :  { %233 = vrot.lane.b32.xlu1 %v1385_v32, %s1615_s2 }
 0x204   :  { %v234_v33 = vpop.permute.xlu1 %233 }
 0x205   :  { %v236_v34 = vmul.f32 %v234_v33, %v217_v27  ;;  %v94_v27 = vld [vmem:[%s2048_s0 + $0x18] sm:$0xff] }
 0x206   :  { %1307 = vmatmul.msk.f32.gmra.mxu0 %vm109_vm0, %v94_v27  ;;  %v96_v27 = vld [vmem:[%s2048_s0 + $0x28] sm:$0xff] }
 0x207   :  { %238 = vrot.lane.b32.xlu1 %v236_v34, %s1616_s16 }
 0x279   :  { %v1743_v36 = vpop.permute.xlu1 %238 }
 0x27a   :  { %1313 = vmatmul.msk.f32.vlgmr.msra.gmra.mxu2 %vm175_vm5, %v1743_v36 }
 0x27b   :  { %632 = vmatpush.msra.mxu2 %v1682_v0 }
 0x27d   :  { %633 = vmatpush.msra.mxu2 %v1687_v2  ;;  %v158_v2 = vadd.f32 %v1732_v8, %v157_v1 }
 0x27f   :  { %634 = vmatpush.msra.mxu2 %v1696_v5 }
 0x281   :  { %635 = vmatpush.msra.mxu2 %v1705_v6 }
 0x2fd   :  { %v259_v39 = vpop.f32.mrf.mxu2 }
 0x2fe   :  { %v262_v40 = vadd.f32 %v259_v39, %v155_v38 }
 0x300   :  { %1386 = vtanh.f32 %v262_v40  ;;  %v1314_v42 = vmul.f32 -1.442695, %v262_v40 }
 0x302   :  { %1388 = vpow2.f32 %v1314_v42 }
 0x306   :  { %v1387_v41 = vpop.eup %1386 }
 0x307   :  { %285 = vrot.lane.b32.xlu2 %v1387_v41, %s1615_s2 }
 0x308   :  { %v1389_v43 = vpop.eup %1388 }
 0x309   :  { %v266_v44 = vadd.f32 1.0, %v1389_v43 }
 0x30b   :  { %1390 = vrcp.f32 %v266_v44  ;;  %v278_v50 = vand.u32 2147483648, %v266_v44  ;;  %vm272_vm7 = vweird.f32 %v266_v44  ;;  %v276_v51 = vand.u32 2147483647, %v266_v44 }
 0x30d   :  { %v279_v53 = vor.u32 1.1754944e-38, %v278_v50  ;;  %vm277_vm9 = vcmp.eq.f32.partialorder %v276_v51, 8.507059e+37 }
 0x311   :  { %v1391_v45 = vpop.eup %1390 }
 0x312   :  { %v268_v46 = vmul.f32 %v1391_v45, %v266_v44  ;;  %vm273_vm6 = vweird.f32 %v1391_v45 }
 0x313   :  { %vm274_vm8 = vmor %vm272_vm7, %vm273_vm6 }
 0x314   :  { %v269_v47 = vsub.f32 1.0, %v268_v46 }
 0x316   :  { %v270_v48 = vmul.f32 %v1391_v45, %v269_v47 }
 0x318   :  { %v271_v49 = vadd.f32 %v1391_v45, %v270_v48 }
 0x31a   :  { %v275_v52 = vsel %vm274_vm8, %v1391_v45, %v271_v49 }
 0x31b   :  { %v280_v55 = vsel %vm277_vm9, %v279_v53, %v275_v52 }
 0x31c   :  { %v283_v57 = vmul.f32 %v280_v55, %v230_v31  ;;  %v160_v31 = vpop.f32.mrf.mxu0 }
 0x31d   :  { %v161_v32 = vadd.f32 %v1732_v8, %v160_v31 }
 0x361   :  { %v286_v54 = vpop.permute.xlu2 %285 }
 0x362   :  { %v288_v56 = vmul.f32 %v286_v54, %v280_v55 }
 0x364   :  { %290 = vrot.lane.b32.xlu2 %v288_v56, %s1616_s16 }
 0x3be   :  { %v291_v58 = vpop.permute.xlu2 %290 }
 0x3bf   :  { %v293_v59 = vadd.f32 %v291_v58, %v283_v57  ;;  %v95_v58 = vld [vmem:[%s2048_s0 + $0x20] sm:$0xff] }
 0x3c0   :  { %1308 = vmatmul.msk.f32.gmra.mxu0 %vm109_vm0, %v95_v58  ;;  %v1837_v58 = vld [vmem:[%s2053_s5 + $0x10] sm:$0xff] }
 0x3c1   :  { %1392 = vtanh.f32 %v293_v59 }
 0x3c7   :  { %v1393_v60 = vpop.eup %1392 }
 0x3c8   :  { %296 = vrot.lane.b32.xlu0 %v1393_v60, %s1615_s2  ;;  %1309 = vmatmul.msk.f32.gmra.mxu0 %vm109_vm0, %v96_v27 }
 0x43a   :  { %v297_v61 = vpop.permute.xlu0 %296 }
 0x43b   :  { %v299_v62 = vmul.f32 %v297_v61, %v280_v55 }
 0x43d   :  { %301 = vrot.lane.b32.xlu1 %v299_v62, %s1616_s16  ;;  %v163_v60 = vpop.f32.mrf.mxu0 }
 0x43e   :  { %v164_v61 = vadd.f32 %v1732_v8, %v163_v60  ;;  %v1851_v60 = vld [vmem:[%s2053_s5] sm:$0xff] }
 0x4af   :  { %v1760_v0 = vpop.permute.xlu1 %301 }
 0x4b0   :  { %1315 = vmatmul.msk.f32.vlgmr.msra.gmra.mxu3 %vm175_vm5, %v1760_v0 }
 0x533   :  { %v322_v3 = vpop.f32.mrf.mxu3 }
 0x534   :  { %v325_v4 = vadd.f32 %v322_v3, %v158_v2 }
 0x536   :  { %1394 = vtanh.f32 %v325_v4  ;;  %v1316_v6 = vmul.f32 -1.442695, %v325_v4 }
 0x538   :  { %1396 = vpow2.f32 %v1316_v6 }
 0x53c   :  { %v1395_v5 = vpop.eup %1394 }
 0x53d   :  { %348 = vrot.lane.b32.xlu2 %v1395_v5, %s1615_s2 }
 0x53e   :  { %v1397_v9 = vpop.eup %1396 }
 0x53f   :  { %v329_v10 = vadd.f32 1.0, %v1397_v9 }
 0x541   :  { %1398 = vrcp.f32 %v329_v10  ;;  %v341_v16 = vand.u32 2147483648, %v329_v10  ;;  %vm335_vm11 = vweird.f32 %v329_v10  ;;  %v339_v17 = vand.u32 2147483647, %v329_v10 }
 0x543   :  { %v342_v19 = vor.u32 1.1754944e-38, %v341_v16  ;;  %vm340_vm13 = vcmp.eq.f32.partialorder %v339_v17, 8.507059e+37 }
 0x547   :  { %v1399_v11 = vpop.eup %1398 }
 0x548   :  { %v331_v12 = vmul.f32 %v1399_v11, %v329_v10  ;;  %vm336_vm10 = vweird.f32 %v1399_v11 }
 0x549   :  { %vm337_vm12 = vmor %vm335_vm11, %vm336_vm10 }
 0x54a   :  { %v332_v13 = vsub.f32 1.0, %v331_v12 }
 0x54c   :  { %v333_v14 = vmul.f32 %v1399_v11, %v332_v13 }
 0x54e   :  { %v334_v15 = vadd.f32 %v1399_v11, %v333_v14 }
 0x550   :  { %v338_v18 = vsel %vm337_vm12, %v1399_v11, %v334_v15 }
 0x551   :  { %v343_v21 = vsel %vm340_vm13, %v342_v19, %v338_v18 }
 0x552   :  { %v346_v23 = vmul.f32 %v343_v21, %v293_v59 }
 0x597   :  { %v349_v20 = vpop.permute.xlu2 %348 }
 0x598   :  { %v351_v22 = vmul.f32 %v349_v20, %v343_v21 }
 0x59a   :  { %353 = vrot.lane.b32.xlu0 %v351_v22, %s1616_s16 }
 0x60c   :  { %v354_v24 = vpop.permute.xlu0 %353 }
 0x60d   :  { %v356_v25 = vadd.f32 %v354_v24, %v346_v23 }
 0x60f   :  { %1400 = vtanh.f32 %v356_v25 }
 0x615   :  { %v1401_v26 = vpop.eup %1400 }
 0x616   :  { %359 = vrot.lane.b32.xlu1 %v1401_v26, %s1615_s2  ;;  %v680_v26 = vld [vmem:[%s2052_s4 + $0x10] sm:$0xff] }
 0x688   :  { %v360_v28 = vpop.permute.xlu1 %359 }
 0x689   :  { %v362_v29 = vmul.f32 %v360_v28, %v343_v21  ;;  %v679_v28 = vld [vmem:[%s2052_s4 + $0x8] sm:$0xff] }
 0x68b   :  { %364 = vrot.lane.b32.xlu2 %v362_v29, %s1616_s16  ;;  %v678_v29 = vld [vmem:[%s2052_s4] sm:$0xff] }
 0x6e5   :  { %v1773_v30 = vpop.permute.xlu2 %364 }
 0x6e6   :  { %1317 = vmatmul.msk.f32.vlgmr.msrb.gmra.mxu1 %vm175_vm5, %v1773_v30 }
 0x763   :  { %v385_v33 = vpop.f32.mrf.mxu1 }
 0x764   :  { %v388_v34 = vadd.f32 %v385_v33, %v161_v32  ;;  %v166_v32 = vpop.f32.mrf.mxu0 }
 0x765   :  { %v167_v33 = vadd.f32 %v1732_v8, %v166_v32 }
 0x766   :  { %1402 = vtanh.f32 %v388_v34  ;;  %v1318_v37 = vmul.f32 -1.442695, %v388_v34 }
 0x768   :  { %1404 = vpow2.f32 %v1318_v37 }
 0x76c   :  { %v1403_v35 = vpop.eup %1402 }
 0x76d   :  { %411 = vrot.lane.b32.xlu0 %v1403_v35, %s1615_s2 }
 0x76e   :  { %v1405_v38 = vpop.eup %1404 }
 0x76f   :  { %v392_v39 = vadd.f32 1.0, %v1405_v38 }
 0x771   :  { %1406 = vrcp.f32 %v392_v39  ;;  %v404_v45 = vand.u32 2147483648, %v392_v39  ;;  %vm398_vm15 = vweird.f32 %v392_v39  ;;  %v402_v46 = vand.u32 2147483647, %v392_v39 }
 0x773   :  { %v405_v48 = vor.u32 1.1754944e-38, %v404_v45  ;;  %vm403_vm2 = vcmp.eq.f32.partialorder %v402_v46, 8.507059e+37 }
 0x777   :  { %v1407_v40 = vpop.eup %1406 }
 0x778   :  { %v394_v41 = vmul.f32 %v1407_v40, %v392_v39  ;;  %vm399_vm14 = vweird.f32 %v1407_v40 }
 0x779   :  { %vm400_vm1 = vmor %vm398_vm15, %vm399_vm14 }
 0x77a   :  { %v395_v42 = vsub.f32 1.0, %v394_v41 }
 0x77c   :  { %v396_v43 = vmul.f32 %v1407_v40, %v395_v42 }
 0x77e   :  { %v397_v44 = vadd.f32 %v1407_v40, %v396_v43 }
 0x780   :  { %v401_v47 = vsel %vm400_vm1, %v1407_v40, %v397_v44 }
 0x781   :  { %v406_v50 = vsel %vm403_vm2, %v405_v48, %v401_v47 }
 0x782   :  { %v409_v52 = vmul.f32 %v406_v50, %v356_v25  ;;  %v681_v25 = vld [vmem:[%s2052_s4 + $0x18] sm:$0xff] }
 0x783   :  { %707 = vmatpush.msra.mxu3 %v681_v25 }
 0x785   :  { %708 = vmatpush.msra.mxu3 %v680_v26 }
 0x787   :  { %709 = vmatpush.msra.mxu3 %v679_v28 }
 0x789   :  { %710 = vmatpush.msra.mxu3 %v678_v29 }
 0x7df   :  { %v412_v49 = vpop.permute.xlu0 %411 }
 0x7e0   :  { %v414_v51 = vmul.f32 %v412_v49, %v406_v50 }
 0x7e2   :  { %416 = vrot.lane.b32.xlu1 %v414_v51, %s1616_s16 }
 0x854   :  { %v417_v53 = vpop.permute.xlu1 %416 }
 0x855   :  { %v419_v54 = vadd.f32 %v417_v53, %v409_v52 }
 0x857   :  { %1408 = vtanh.f32 %v419_v54 }
 0x85d   :  { %v1409_v55 = vpop.eup %1408 }
 0x85e   :  { %422 = vrot.lane.b32.xlu2 %v1409_v55, %s1615_s2 }
 0x8b8   :  { %v423_v56 = vpop.permute.xlu2 %422 }
 0x8b9   :  { %v425_v57 = vmul.f32 %v423_v56, %v406_v50 }
 0x8bb   :  { %427 = vrot.lane.b32.xlu0 %v425_v57, %s1616_s16  ;;  %v1832_v57 = vld [vmem:[%s2053_s5 + $0x18] sm:$0xff] }
 0x8bc   :  { %748 = vmatpush.msrb.mxu1 %v1832_v57 }
 0x8be   :  { %749 = vmatpush.msrb.mxu1 %v1837_v58 }
 0x92d   :  { %v428_v59 = vpop.permute.xlu0 %427 }
 0x92e   :  { %1319 = vmatmul.msk.f32.vlgmr.msrb.gmra.mxu2 %vm175_vm5, %v428_v59 }
 0x92f   :  { %811 = vmatpush.msrb.mxu2 %v1832_v57 }
 0x931   :  { %812 = vmatpush.msrb.mxu2 %v1837_v58 }
 0x9b1   :  { %v448_v62 = vpop.f32.mrf.mxu2 }
 0x9b2   :  { %v451_v63 = vadd.f32 %v448_v62, %v164_v61 }
 0x9b4   :  { %1410 = vtanh.f32 %v451_v63  ;;  %v1320_v2 = vmul.f32 -1.442695, %v451_v63 }
 0x9b6   :  { %1412 = vpow2.f32 %v1320_v2 }
 0x9ba   :  { %v1411_v1 = vpop.eup %1410 }
 0x9bb   :  { %474 = vrot.lane.b32.xlu1 %v1411_v1, %s1615_s2 }
 0x9bc   :  { %v1413_v3 = vpop.eup %1412 }
 0x9bd   :  { %v455_v4 = vadd.f32 1.0, %v1413_v3  ;;  %v1872_v3 = vld [vmem:[%s2054_s6] ss:$0 sm:$0xff] }
 0x9bf   :  { %1414 = vrcp.f32 %v455_v4  ;;  %v467_v12 = vand.u32 2147483648, %v455_v4  ;;  %vm461_vm4 = vweird.f32 %v455_v4  ;;  %v465_v13 = vand.u32 2147483647, %v455_v4 }
 0x9c1   :  { %v468_v15 = vor.u32 1.1754944e-38, %v467_v12  ;;  %vm466_vm7 = vcmp.eq.f32.partialorder %v465_v13, 8.507059e+37 }
 0x9c5   :  { %v1415_v5 = vpop.eup %1414 }
 0x9c6   :  { %v457_v6 = vmul.f32 %v1415_v5, %v455_v4  ;;  %vm462_vm3 = vweird.f32 %v1415_v5 }
 0x9c7   :  { %vm463_vm6 = vmor %vm461_vm4, %vm462_vm3 }
 0x9c8   :  { %v458_v9 = vsub.f32 1.0, %v457_v6 }
 0x9ca   :  { %v459_v10 = vmul.f32 %v1415_v5, %v458_v9 }
 0x9cc   :  { %v460_v11 = vadd.f32 %v1415_v5, %v459_v10 }
 0x9ce   :  { %v464_v14 = vsel %vm463_vm6, %v1415_v5, %v460_v11 }
 0x9cf   :  { %v469_v17 = vsel %vm466_vm7, %v468_v15, %v464_v14 }
 0x9d0   :  { %v472_v19 = vmul.f32 %v469_v17, %v419_v54  ;;  %v97_v54 = vld [vmem:[%s2048_s0 + $0x30] sm:$0xff] }
 0x9d1   :  { %1310 = vmatmul.msk.f32.gmra.mxu0 %vm109_vm0, %v97_v54  ;;  %v1896_v54 = vld [vmem:[#allocation6 + $0x10] sm:$0xff] }
 0xa2d   :  { %v475_v16 = vpop.permute.xlu1 %474 }
 0xa2e   :  { %v477_v18 = vmul.f32 %v475_v16, %v469_v17 }
 0xa30   :  { %479 = vrot.lane.b32.xlu2 %v477_v18, %s1616_s16 }
 0xa4e   :  { %v169_v62 = vpop.f32.mrf.mxu0 }
 0xa4f   :  { %v170_v63 = vadd.f32 %v1732_v8, %v169_v62 }
 0xa8a   :  { %v480_v20 = vpop.permute.xlu2 %479 }
 0xa8b   :  { %v482_v21 = vadd.f32 %v480_v20, %v472_v19 }
 0xa8d   :  { %1416 = vtanh.f32 %v482_v21 }
 0xa93   :  { %v1417_v22 = vpop.eup %1416 }
 0xa94   :  { %485 = vrot.lane.b32.xlu0 %v1417_v22, %s1615_s2 }
 0xb06   :  { %v486_v23 = vpop.permute.xlu0 %485 }
 0xb07   :  { %v488_v24 = vmul.f32 %v486_v23, %v469_v17 }
 0xb09   :  { %490 = vrot.lane.b32.xlu1 %v488_v24, %s1616_s16 }
 0xb7b   :  { %v491_v31 = vpop.permute.xlu1 %490 }
 0xb7c   :  { %1321 = vmatmul.msk.f32.vlgmr.msrb.gmra.mxu3 %vm175_vm5, %v491_v31 }
 0xb84   :  { %1327 = vmatmul.msk.f32.vlgmr.msra.gmra.mxu3 %vm175_vm5, %v1743_v36 }
 0xb8c   :  { %1328 = vmatmul.msk.f32.gmra.mxu3 %vm175_vm5, %v1760_v0 }
 0xb94   :  { %1329 = vmatmul.msk.f32.gmra.mxu3 %vm175_vm5, %v1773_v30 }
 0xb9c   :  { %1330 = vmatmul.msk.f32.gmra.mxu3 %vm175_vm5, %v428_v59  ;;  %v1844_v59 = vld [vmem:[%s2053_s5 + $0x8] sm:$0xff] }
 0xb9d   :  { %750 = vmatpush.msrb.mxu1 %v1844_v59  ;;  %813 = vmatpush.msrb.mxu2 %v1844_v59 }
 0xb9f   :  { %751 = vmatpush.msrb.mxu1 %v1851_v60  ;;  %814 = vmatpush.msrb.mxu2 %v1851_v60 }
 0xba4   :  { %1331 = vmatmul.msk.f32.gmra.mxu3 %vm175_vm5, %v491_v31 }
 0xbff   :  { %v511_v34 = vpop.f32.mrf.mxu3 }
 0xc00   :  { %v514_v35 = vadd.f32 %v511_v34, %v167_v33 }
 0xc02   :  { %1418 = vtanh.f32 %v514_v35  ;;  %v1322_v36 = vmul.f32 -1.442695, %v514_v35 }
 0xc04   :  { %1420 = vpow2.f32 %v1322_v36 }
 0xc08   :  { %v1419_v37 = vpop.eup %1418 }
 0xc09   :  { %537 = vrot.lane.b32.xlu2 %v1419_v37, %s1615_s2 }
 0xc0a   :  { %v1421_v38 = vpop.eup %1420 }
 0xc0b   :  { %v518_v0 = vadd.f32 1.0, %v1421_v38 }
 0xc0d   :  { %1422 = vrcp.f32 %v518_v0  ;;  %v530_v43 = vand.u32 2147483648, %v518_v0  ;;  %vm524_vm9 = vweird.f32 %v518_v0  ;;  %v528_v44 = vand.u32 2147483647, %v518_v0 }
 0xc0f   :  { %v531_v46 = vor.u32 1.1754944e-38, %v530_v43  ;;  %vm529_vm11 = vcmp.eq.f32.partialorder %v528_v44, 8.507059e+37 }
 0xc13   :  { %v1423_v39 = vpop.eup %1422 }
 0xc14   :  { %v520_v30 = vmul.f32 %v1423_v39, %v518_v0  ;;  %vm525_vm8 = vweird.f32 %v1423_v39 }
 0xc15   :  { %vm526_vm10 = vmor %vm524_vm9, %vm525_vm8 }
 0xc16   :  { %v521_v40 = vsub.f32 1.0, %v520_v30 }
 0xc18   :  { %v522_v41 = vmul.f32 %v1423_v39, %v521_v40 }
 0xc1a   :  { %v523_v42 = vadd.f32 %v1423_v39, %v522_v41 }
 0xc1c   :  { %v527_v45 = vsel %vm526_vm10, %v1423_v39, %v523_v42 }
 0xc1d   :  { %v532_v48 = vsel %vm529_vm11, %v531_v46, %v527_v45 }
 0xc1e   :  { %v535_v50 = vmul.f32 %v532_v48, %v482_v21 }
 0xc63   :  { %v538_v47 = vpop.permute.xlu2 %537 }
 0xc64   :  { %v540_v49 = vmul.f32 %v538_v47, %v532_v48 }
 0xc66   :  { %542 = vrot.lane.b32.xlu0 %v540_v49, %s1616_s16 }
 0xcd8   :  { %v543_v51 = vpop.permute.xlu0 %542 }
 0xcd9   :  { %v1820_v52 = vadd.f32 %v543_v51, %v535_v50 }
 0xcdb   :  { %1424 = vtanh.f32 %v1820_v52 }
 0xce1   :  { %v1425_v53 = vpop.eup %1424 }
 0xce2   :  { %548 = vrot.lane.b32.xlu1 %v1425_v53, %s1615_s2  ;;  %v1894_v53 = vld [vmem:[#allocation6 + $0x18] sm:$0xff] }
 0xce3   :  { %1260 = vmatpush.msrb.mxu0 %v1894_v53 }
 0xce5   :  { %1261 = vmatpush.msrb.mxu0 %v1896_v54 }
 0xd54   :  { %v549_v55 = vpop.permute.xlu1 %548 }
 0xd55   :  { %v551_v56 = vmul.f32 %v549_v55, %v532_v48  ;;  %v1899_v55 = vld [vmem:[#allocation6 + $0x8] sm:$0xff] }
 0xd56   :  { %1262 = vmatpush.msrb.mxu0 %v1899_v55 }
 0xd57   :  { %553 = vrot.lane.b32.xlu2 %v551_v56, %s1616_s16  ;;  %v1902_v56 = vld [vmem:[#allocation6] sm:$0xff] }
 0xd58   :  { %1263 = vmatpush.msrb.mxu0 %v1902_v56 }
 0xdb1   :  { %v554_v61 = vpop.permute.xlu2 %553 }
 0xdb2   :  { %1323 = vmatmul.msk.f32.vlgmr.msra.gmra.mxu1 %vm175_vm5, %v554_v61  ;;  %1332 = vmatmul.msk.f32.gmra.mxu3 %vm175_vm5, %v554_v61 }
 0xdb3   :  { %874 = vmatpush.msra.mxu1 %v1832_v57 }
 0xdb5   :  { %875 = vmatpush.msra.mxu1 %v1837_v58 }
 0xdb7   :  { %876 = vmatpush.msra.mxu1 %v1844_v59 }
 0xdb9   :  { %877 = vmatpush.msra.mxu1 %v1851_v60 }
 0xdba   :  { %752 = vmatmul.f32.vlgmr.msrb.gmra.mxu1 %v1614_v7  ;;  %v712_v7 = vpop.f32.mrf.mxu3 }
 0xdbb   :  { %1000 = vmatpush.msrb.mxu1 %v1832_v57  ;;  %v713_v4 = vadd.f32 %v1872_v3, %v712_v7 }
 0xdbd   :  { %1001 = vmatpush.msrb.mxu1 %v1837_v58 }
 0xdbf   :  { %1002 = vmatpush.msrb.mxu1 %v1844_v59 }
 0xdc1   :  { %1003 = vmatpush.msrb.mxu1 %v1851_v60 }
 0xe2f   :  { %v574_v1 = vpop.f32.mrf.mxu1 }
 0xe30   :  { %v577_v2 = vadd.f32 %v574_v1, %v170_v63 }
 0xe32   :  { %1426 = vtanh.f32 %v577_v2  ;;  %v1324_v11 = vmul.f32 -1.442695, %v577_v2  ;;  %v1919_v2 = vld [vmem:[#allocation7] ss:$0 sm:$0xff] }
 0xe37   :  { %v753_v5 = vpop.f32.mrf.mxu1 }
 0xe38   :  { %v1427_v6 = vpop.eup %1426  ;;  %v756_v9 = vadd.f32 %v753_v5, %v713_v4 }
 0xe39   :  { %600 = vrot.lane.b32.xlu0 %v1427_v6, %s1615_s2 }
 0xe3a   :  { %1428 = vtanh.f32 %v756_v9  ;;  %v1335_v12 = vmul.f32 -1.442695, %v756_v9  ;;  %v715_v9 = vpop.f32.mrf.mxu3 }
 0xe3b   :  { %1430 = vpow2.f32 %v1324_v11 }
 0xe3c   :  { %1432 = vpow2.f32 %v1335_v12 }
 0xe40   :  { %v1429_v10 = vpop.eup %1428 }
 0xe41   :  { %779 = vrot.lane.b32.xlu1 %v1429_v10, %s1615_s2  ;;  %v1431_v13 = vpop.eup %1430  ;;  %v716_v10 = vadd.f32 %v1872_v3, %v715_v9 }
 0xe42   :  { %v581_v14 = vadd.f32 1.0, %v1431_v13  ;;  %v1433_v15 = vpop.eup %1432 }
 0xe43   :  { %v760_v16 = vadd.f32 1.0, %v1433_v15 }
 0xe44   :  { %1434 = vrcp.f32 %v581_v14  ;;  %v593_v25 = vand.u32 2147483648, %v581_v14  ;;  %vm587_vm13 = vweird.f32 %v581_v14  ;;  %v591_v26 = vand.u32 2147483647, %v581_v14 }
 0xe45   :  { %1436 = vrcp.f32 %v760_v16  ;;  %v772_v35 = vand.u32 2147483648, %v760_v16  ;;  %vm766_vm2 = vweird.f32 %v760_v16  ;;  %v770_v37 = vand.u32 2147483647, %v760_v16 }
 0xe46   :  { %v594_v29 = vor.u32 1.1754944e-38, %v593_v25  ;;  %vm592_vm15 = vcmp.eq.f32.partialorder %v591_v26, 8.507059e+37 }
 0xe47   :  { %v773_v38 = vor.u32 1.1754944e-38, %v772_v35  ;;  %vm771_vm4 = vcmp.eq.f32.partialorder %v770_v37, 8.507059e+37  ;;  %v718_v37 = vpop.f32.mrf.mxu3 }
 0xe4a   :  { %v1435_v17 = vpop.eup %1434 }
 0xe4b   :  { %v583_v18 = vmul.f32 %v1435_v17, %v581_v14  ;;  %v1437_v20 = vpop.eup %1436  ;;  %vm588_vm12 = vweird.f32 %v1435_v17 }
 0xe4c   :  { %v762_v22 = vmul.f32 %v1437_v20, %v760_v16  ;;  %vm589_vm14 = vmor %vm587_vm13, %vm588_vm12  ;;  %vm767_vm1 = vweird.f32 %v1437_v20 }
 0xe4d   :  { %v584_v19 = vsub.f32 1.0, %v583_v18  ;;  %vm768_vm3 = vmor %vm766_vm2, %vm767_vm1 }
 0xe4e   :  { %v763_v24 = vsub.f32 1.0, %v762_v22 }
 0xe4f   :  { %v585_v21 = vmul.f32 %v1435_v17, %v584_v19 }
 0xe50   :  { %v764_v28 = vmul.f32 %v1437_v20, %v763_v24 }
 0xe51   :  { %v586_v23 = vadd.f32 %v1435_v17, %v585_v21 }
 0xe52   :  { %v765_v34 = vadd.f32 %v1437_v20, %v764_v28 }
 0xe53   :  { %v590_v27 = vsel %vm589_vm14, %v1435_v17, %v586_v23 }
 0xe54   :  { %v595_v32 = vsel %vm592_vm15, %v594_v29, %v590_v27  ;;  %v769_v36 = vsel %vm768_vm3, %v1437_v20, %v765_v34 }
 0xe55   :  { %v774_v39 = vsel %vm771_vm4, %v773_v38, %v769_v36  ;;  %v598_v40 = vmul.f32 %v595_v32, %v1820_v52  ;;  %v98_v52 = vld [vmem:[%s2048_s0 + $0x38] sm:$0xff]  ;;  %v719_v36 = vadd.f32 %v1872_v3, %v718_v37 }
 0xe56   :  { %v777_v44 = vmul.f32 0.0, %v774_v39  ;;  %1311 = vmatmul.msk.f32.gmra.mxu0 %vm109_vm0, %v98_v52 }
 0xeab   :  { %v601_v31 = vpop.permute.xlu0 %600 }
 0xeac   :  { %v603_v33 = vmul.f32 %v601_v31, %v595_v32 }
 0xeae   :  { %605 = vrot.lane.b32.xlu2 %v603_v33, %s1616_s16 }
 0xeb3   :  { %v780_v0 = vpop.permute.xlu1 %779 }
 0xeb4   :  { %v782_v30 = vmul.f32 %v780_v0, %v774_v39 }
 0xeb6   :  { %784 = vrot.lane.b32.xlu0 %v782_v30, %s1616_s16 }
 0xed3   :  { %v172_v63 = vpop.f32.mrf.mxu0 }
 0xed4   :  { %v173_v1 = vadd.f32 %v1732_v8, %v172_v63 }
 0xf08   :  { %v606_v41 = vpop.permute.xlu2 %605 }
 0xf09   :  { %v1880_v42 = vadd.f32 %v606_v41, %v598_v40 }
 0xf0b   :  { %1438 = vtanh.f32 %v1880_v42 }
 0xf11   :  { %v1439_v43 = vpop.eup %1438 }
 0xf12   :  { %611 = vrot.lane.b32.xlu1 %v1439_v43, %s1615_s2 }
 0xf28   :  { %v785_v45 = vpop.permute.xlu0 %784 }
 0xf29   :  { %v1884_v46 = vadd.f32 %v785_v45, %v777_v44 }
 0xf2b   :  { %1440 = vtanh.f32 %v1884_v46 }
 0xf31   :  { %v1441_v47 = vpop.eup %1440 }
 0xf32   :  { %790 = vrot.lane.b32.xlu2 %v1441_v47, %s1615_s2 }
 0xf84   :  { %v612_v48 = vpop.permute.xlu1 %611 }
 0xf85   :  { %v614_v49 = vmul.f32 %v612_v48, %v595_v32 }
 0xf87   :  { %616 = vrot.lane.b32.xlu0 %v614_v49, %s1616_s16 }
 0xf8c   :  { %v791_v50 = vpop.permute.xlu2 %790 }
 0xf8d   :  { %v793_v51 = vmul.f32 %v791_v50, %v774_v39 }
 0xf8f   :  { %795 = vrot.lane.b32.xlu1 %v793_v51, %s1616_s16 }
 0xff9   :  { %v617_v61 = vpop.permute.xlu0 %616 }
 0xffa   :  { %1325 = vmatmul.msk.f32.vlgmr.msra.gmra.mxu2 %vm175_vm5, %v617_v61  ;;  %1333 = vmatmul.msk.f32.gmra.mxu3 %vm175_vm5, %v617_v61 }
 0xffb   :  { %937 = vmatpush.msra.mxu2 %v1832_v57 }
 0xffd   :  { %938 = vmatpush.msra.mxu2 %v1837_v58 }
 0xfff   :  { %939 = vmatpush.msra.mxu2 %v1844_v59 }
0x1001   :  { %v796_v62 = vpop.permute.xlu1 %795  ;;  %940 = vmatpush.msra.mxu2 %v1851_v60 }
0x1002   :  { %1336 = vmatmul.msk.f32.vlgmr.msrb.gmra.mxu2 %vm175_vm5, %v796_v62  ;;  %1350 = vmatmul.msk.f32.vlgmr.msrb.gmra.mxu0 %vm175_vm5, %v796_v62 }
0x1003   :  { %1063 = vmatpush.msrb.mxu2 %v1832_v57 }
0x1005   :  { %1064 = vmatpush.msrb.mxu2 %v1837_v58 }
0x1007   :  { %1065 = vmatpush.msrb.mxu2 %v1844_v59 }
0x1009   :  { %1066 = vmatpush.msrb.mxu2 %v1851_v60 }
0x107d   :  { %v637_v7 = vpop.f32.mrf.mxu2 }
0x107e   :  { %v1921_v4 = vadd.f32 %v637_v7, %v173_v1 }
0x107f   :  { %v1265_v5 = vpop.f32.mrf.mxu0 }
0x1080   :  { %v1266_v6 = vadd.f32 %v1919_v2, %v1265_v5 }
0x1082   :  { %1289 = vst [vmem:[%s2057_s9] sm:$0xff] %v1266_v6 }
0x1085   :  { %v816_v11 = vpop.f32.mrf.mxu2 }
0x1086   :  { %v819_v12 = vadd.f32 %v816_v11, %v716_v10 }
0x1088   :  { %1442 = vtanh.f32 %v819_v12  ;;  %v1337_v8 = vmul.f32 -1.442695, %v819_v12 }
0x108a   :  { %1444 = vpow2.f32 %v1337_v8 }
0x108e   :  { %v1443_v13 = vpop.eup %1442 }
0x108f   :  { %842 = vrot.lane.b32.xlu2 %v1443_v13, %s1615_s2  ;;  %v721_v13 = vpop.f32.mrf.mxu3 }
0x1090   :  { %v1445_v14 = vpop.eup %1444  ;;  %v722_v8 = vadd.f32 %v1872_v3, %v721_v13 }
0x1091   :  { %v823_v15 = vadd.f32 1.0, %v1445_v14 }
0x1093   :  { %1446 = vrcp.f32 %v823_v15  ;;  %v835_v21 = vand.u32 2147483648, %v823_v15  ;;  %vm829_vm6 = vweird.f32 %v823_v15  ;;  %v833_v22 = vand.u32 2147483647, %v823_v15 }
0x1095   :  { %v836_v24 = vor.u32 1.1754944e-38, %v835_v21  ;;  %vm834_vm8 = vcmp.eq.f32.partialorder %v833_v22, 8.507059e+37 }
0x1097   :  { %v724_v37 = vpop.f32.mrf.mxu3 }
0x1099   :  { %v1447_v16 = vpop.eup %1446 }
0x109a   :  { %v825_v17 = vmul.f32 %v1447_v16, %v823_v15  ;;  %vm830_vm0 = vweird.f32 %v1447_v16 }
0x109b   :  { %vm831_vm7 = vmor %vm829_vm6, %vm830_vm0 }
0x109c   :  { %v826_v18 = vsub.f32 1.0, %v825_v17 }
0x109e   :  { %v827_v19 = vmul.f32 %v1447_v16, %v826_v18 }
0x10a0   :  { %v828_v20 = vadd.f32 %v1447_v16, %v827_v19 }
0x10a2   :  { %v832_v23 = vsel %vm831_vm7, %v1447_v16, %v828_v20 }
0x10a3   :  { %v837_v26 = vsel %vm834_vm8, %v836_v24, %v832_v23 }
0x10a4   :  { %v840_v28 = vmul.f32 %v837_v26, %v1884_v46 }
0x10e9   :  { %v843_v25 = vpop.permute.xlu2 %842 }
0x10ea   :  { %v845_v27 = vmul.f32 %v843_v25, %v837_v26 }
0x10ec   :  { %847 = vrot.lane.b32.xlu0 %v845_v27, %s1616_s16 }
0x115e   :  { %v848_v29 = vpop.permute.xlu0 %847 }
0x115f   :  { %v850_v31 = vadd.f32 %v848_v29, %v840_v28 }
0x1161   :  { %1448 = vtanh.f32 %v850_v31 }
0x1167   :  { %v1449_v32 = vpop.eup %1448 }
0x1168   :  { %853 = vrot.lane.b32.xlu1 %v1449_v32, %s1615_s2 }
0x11da   :  { %v854_v33 = vpop.permute.xlu1 %853 }
0x11db   :  { %v856_v34 = vmul.f32 %v854_v33, %v837_v26 }
0x11dd   :  { %858 = vrot.lane.b32.xlu2 %v856_v34, %s1616_s16 }
0x1237   :  { %v859_v35 = vpop.permute.xlu2 %858 }
0x1238   :  { %1338 = vmatmul.msk.f32.vlgmr.msra.gmra.mxu1 %vm175_vm5, %v859_v35  ;;  %1351 = vmatmul.msk.f32.gmra.mxu0 %vm175_vm5, %v859_v35 }
0x1239   :  { %1126 = vmatpush.msra.mxu1 %v1832_v57 }
0x123b   :  { %1127 = vmatpush.msra.mxu1 %v1837_v58 }
0x123d   :  { %1128 = vmatpush.msra.mxu1 %v1844_v59 }
0x123f   :  { %1129 = vmatpush.msra.mxu1 %v1851_v60 }
0x12b5   :  { %v879_v38 = vpop.f32.mrf.mxu1  ;;  %v1268_v0 = vpop.f32.mrf.mxu0 }
0x12b6   :  { %v882_v39 = vadd.f32 %v879_v38, %v719_v36  ;;  %v1269_v30 = vadd.f32 %v1919_v2, %v1268_v0  ;;  %v725_v36 = vadd.f32 %v1872_v3, %v724_v37 }
0x12b8   :  { %1450 = vtanh.f32 %v882_v39  ;;  %1290 = vst [vmem:[%s2057_s9 + $0x8] sm:$0xff] %v1269_v30  ;;  %v1339_v41 = vmul.f32 -1.442695, %v882_v39 }
0x12ba   :  { %1452 = vpow2.f32 %v1339_v41 }
0x12be   :  { %v1451_v40 = vpop.eup %1450 }
0x12bf   :  { %905 = vrot.lane.b32.xlu0 %v1451_v40, %s1615_s2 }
0x12c0   :  { %v1453_v43 = vpop.eup %1452 }
0x12c1   :  { %v886_v44 = vadd.f32 1.0, %v1453_v43 }
0x12c3   :  { %1454 = vrcp.f32 %v886_v44  ;;  %v898_v50 = vand.u32 2147483648, %v886_v44  ;;  %vm892_vm10 = vweird.f32 %v886_v44  ;;  %v896_v51 = vand.u32 2147483647, %v886_v44 }
0x12c5   :  { %v899_v61 = vor.u32 1.1754944e-38, %v898_v50  ;;  %vm897_vm12 = vcmp.eq.f32.partialorder %v896_v51, 8.507059e+37 }
0x12c9   :  { %v1455_v45 = vpop.eup %1454 }
0x12ca   :  { %v888_v46 = vmul.f32 %v1455_v45, %v886_v44  ;;  %vm893_vm9 = vweird.f32 %v1455_v45 }
0x12cb   :  { %vm894_vm11 = vmor %vm892_vm10, %vm893_vm9 }
0x12cc   :  { %v889_v47 = vsub.f32 1.0, %v888_v46 }
0x12ce   :  { %v890_v48 = vmul.f32 %v1455_v45, %v889_v47 }
0x12d0   :  { %v891_v49 = vadd.f32 %v1455_v45, %v890_v48 }
0x12d2   :  { %v895_v52 = vsel %vm894_vm11, %v1455_v45, %v891_v49 }
0x12d3   :  { %v900_v63 = vsel %vm897_vm12, %v899_v61, %v895_v52 }
0x12d4   :  { %v903_v7 = vmul.f32 %v900_v63, %v850_v31 }
0x1331   :  { %v906_v62 = vpop.permute.xlu0 %905 }
0x1332   :  { %v908_v1 = vmul.f32 %v906_v62, %v900_v63 }
0x1334   :  { %910 = vrot.lane.b32.xlu1 %v908_v1, %s1616_s16 }
0x13a6   :  { %v911_v5 = vpop.permute.xlu1 %910 }
0x13a7   :  { %v913_v6 = vadd.f32 %v911_v5, %v903_v7 }
0x13a9   :  { %1456 = vtanh.f32 %v913_v6 }
0x13af   :  { %v1457_v9 = vpop.eup %1456 }
0x13b0   :  { %916 = vrot.lane.b32.xlu2 %v1457_v9, %s1615_s2 }
0x140a   :  { %v917_v10 = vpop.permute.xlu2 %916 }
0x140b   :  { %v919_v11 = vmul.f32 %v917_v10, %v900_v63 }
0x140d   :  { %921 = vrot.lane.b32.xlu0 %v919_v11, %s1616_s16  ;;  %v727_v11 = vpop.f32.mrf.mxu3 }
0x140e   :  { %v728_v13 = vadd.f32 %v1872_v3, %v727_v11 }
0x147f   :  { %v1948_v12 = vpop.permute.xlu0 %921 }
0x1480   :  { %1340 = vmatmul.msk.f32.vlgmr.msra.gmra.mxu2 %vm175_vm5, %v1948_v12 }
0x1481   :  { %1189 = vmatpush.msra.mxu2 %v1832_v57 }
0x1483   :  { %1190 = vmatpush.msra.mxu2 %v1837_v58 }
0x1485   :  { %1191 = vmatpush.msra.mxu2 %v1844_v59 }
0x1487   :  { %1192 = vmatpush.msra.mxu2 %v1851_v60 }
0x1503   :  { %v942_v14 = vpop.f32.mrf.mxu2 }
0x1504   :  { %v945_v15 = vadd.f32 %v942_v14, %v722_v8 }
0x1506   :  { %1458 = vtanh.f32 %v945_v15  ;;  %v1341_v17 = vmul.f32 -1.442695, %v945_v15 }
0x1508   :  { %1460 = vpow2.f32 %v1341_v17 }
0x150c   :  { %v1459_v16 = vpop.eup %1458 }
0x150d   :  { %968 = vrot.lane.b32.xlu1 %v1459_v16, %s1615_s2 }
0x150e   :  { %v1461_v18 = vpop.eup %1460 }
0x150f   :  { %v949_v19 = vadd.f32 1.0, %v1461_v18 }
0x1511   :  { %1462 = vrcp.f32 %v949_v19  ;;  %v961_v60 = vand.u32 2147483648, %v949_v19  ;;  %vm955_vm14 = vweird.f32 %v949_v19  ;;  %v959_v22 = vand.u32 2147483647, %v949_v19 }
0x1513   :  { %v962_v24 = vor.u32 1.1754944e-38, %v961_v60  ;;  %vm960_vm1 = vcmp.eq.f32.partialorder %v959_v22, 8.507059e+37 }
0x1517   :  { %v1463_v57 = vpop.eup %1462 }
0x1518   :  { %v951_v58 = vmul.f32 %v1463_v57, %v949_v19  ;;  %vm956_vm13 = vweird.f32 %v1463_v57 }
0x1519   :  { %vm957_vm15 = vmor %vm955_vm14, %vm956_vm13 }
0x151a   :  { %v952_v20 = vsub.f32 1.0, %v951_v58 }
0x151c   :  { %v953_v59 = vmul.f32 %v1463_v57, %v952_v20 }
0x151e   :  { %v954_v21 = vadd.f32 %v1463_v57, %v953_v59 }
0x1520   :  { %v958_v23 = vsel %vm957_vm15, %v1463_v57, %v954_v21 }
0x1521   :  { %v963_v26 = vsel %vm960_vm1, %v962_v24, %v958_v23 }
0x1522   :  { %v966_v28 = vmul.f32 %v963_v26, %v913_v6 }
0x157f   :  { %v969_v25 = vpop.permute.xlu1 %968 }
0x1580   :  { %v971_v27 = vmul.f32 %v969_v25, %v963_v26 }
0x1582   :  { %973 = vrot.lane.b32.xlu2 %v971_v27, %s1616_s16 }
0x15dc   :  { %v974_v29 = vpop.permute.xlu2 %973 }
0x15dd   :  { %v976_v31 = vadd.f32 %v974_v29, %v966_v28  ;;  %v1326_v28 = vmul.f32 -1.442695, %v1921_v4 }
0x15df   :  { %1464 = vtanh.f32 %v976_v31 }
0x15e5   :  { %v1465_v32 = vpop.eup %1464 }
0x15e6   :  { %979 = vrot.lane.b32.xlu0 %v1465_v32, %s1615_s2 }
0x1658   :  { %v980_v33 = vpop.permute.xlu0 %979 }
0x1659   :  { %v982_v34 = vmul.f32 %v980_v33, %v963_v26 }
0x165b   :  { %984 = vrot.lane.b32.xlu1 %v982_v34, %s1616_s16 }
0x16cd   :  { %v1961_v35 = vpop.permute.xlu1 %984 }
0x16ce   :  { %1342 = vmatmul.msk.f32.vlgmr.msrb.gmra.mxu1 %vm175_vm5, %v1961_v35 }
0x16cf   :  { %1358 = vmatpush.msrb.mxu1 %v1894_v53 }
0x16d1   :  { %1360 = vmatpush.msrb.mxu1 %v1896_v54 }
0x16d3   :  { %1362 = vmatpush.msrb.mxu1 %v1899_v55 }
0x16d5   :  { %1364 = vmatpush.msrb.mxu1 %v1902_v56 }
0x174b   :  { %v1005_v38 = vpop.f32.mrf.mxu1 }
0x174c   :  { %v1008_v0 = vadd.f32 %v1005_v38, %v725_v36 }
0x174e   :  { %1466 = vtanh.f32 %v1008_v0  ;;  %v1343_v30 = vmul.f32 -1.442695, %v1008_v0 }
0x1750   :  { %1468 = vpow2.f32 %v1343_v30 }
0x1754   :  { %v1467_v39 = vpop.eup %1466 }
0x1755   :  { %1031 = vrot.lane.b32.xlu2 %v1467_v39, %s1615_s2 }
0x1756   :  { %v1469_v40 = vpop.eup %1468 }
0x1757   :  { %v1012_v41 = vadd.f32 1.0, %v1469_v40 }
0x1759   :  { %1470 = vrcp.f32 %v1012_v41  ;;  %v1024_v48 = vand.u32 2147483648, %v1012_v41  ;;  %vm1018_vm3 = vweird.f32 %v1012_v41  ;;  %v1022_v49 = vand.u32 2147483647, %v1012_v41 }
0x175b   :  { %v1025_v51 = vor.u32 1.1754944e-38, %v1024_v48  ;;  %vm1023_vm0 = vcmp.eq.f32.partialorder %v1022_v49, 8.507059e+37 }
0x175f   :  { %v1471_v43 = vpop.eup %1470 }
0x1760   :  { %v1014_v44 = vmul.f32 %v1471_v43, %v1012_v41  ;;  %vm1019_vm2 = vweird.f32 %v1471_v43 }
0x1761   :  { %vm1020_vm4 = vmor %vm1018_vm3, %vm1019_vm2 }
0x1762   :  { %v1015_v45 = vsub.f32 1.0, %v1014_v44 }
0x1764   :  { %v1016_v46 = vmul.f32 %v1471_v43, %v1015_v45 }
0x1766   :  { %v1017_v47 = vadd.f32 %v1471_v43, %v1016_v46  ;;  %v730_v46 = vpop.f32.mrf.mxu3 }
0x1768   :  { %v1021_v50 = vsel %vm1020_vm4, %v1471_v43, %v1017_v47  ;;  %v731_v47 = vadd.f32 %v1872_v3, %v730_v46 }
0x1769   :  { %v1026_v61 = vsel %vm1023_vm0, %v1025_v51, %v1021_v50 }
0x176a   :  { %v1029_v63 = vmul.f32 %v1026_v61, %v976_v31 }
0x17af   :  { %v1032_v52 = vpop.permute.xlu2 %1031 }
0x17b0   :  { %v1034_v62 = vmul.f32 %v1032_v52, %v1026_v61 }
0x17b2   :  { %1036 = vrot.lane.b32.xlu0 %v1034_v62, %s1616_s16 }
0x1824   :  { %v1037_v1 = vpop.permute.xlu0 %1036 }
0x1825   :  { %v1039_v7 = vadd.f32 %v1037_v1, %v1029_v63 }
0x1827   :  { %1472 = vtanh.f32 %v1039_v7 }
0x182d   :  { %v1473_v5 = vpop.eup %1472 }
0x182e   :  { %1042 = vrot.lane.b32.xlu1 %v1473_v5, %s1615_s2 }
0x18a0   :  { %v1043_v6 = vpop.permute.xlu1 %1042 }
0x18a1   :  { %v1045_v9 = vmul.f32 %v1043_v6, %v1026_v61 }
0x18a3   :  { %1047 = vrot.lane.b32.xlu2 %v1045_v9, %s1616_s16 }
0x18fd   :  { %v1974_v10 = vpop.permute.xlu2 %1047 }
0x18fe   :  { %1344 = vmatmul.msk.f32.vlgmr.msrb.gmra.mxu2 %vm175_vm5, %v1974_v10 }
0x18ff   :  { %1359 = vmatpush.msrb.mxu2 %v1894_v53 }
0x1901   :  { %1361 = vmatpush.msrb.mxu2 %v1896_v54 }
0x1903   :  { %1363 = vmatpush.msrb.mxu2 %v1899_v55 }
0x1905   :  { %1365 = vmatpush.msrb.mxu2 %v1902_v56 }
0x1981   :  { %v1068_v8 = vpop.f32.mrf.mxu2 }
0x1982   :  { %v1071_v14 = vadd.f32 %v1068_v8, %v728_v13 }
0x1984   :  { %1474 = vtanh.f32 %v1071_v14  ;;  %v1345_v16 = vmul.f32 -1.442695, %v1071_v14 }
0x1986   :  { %1476 = vpow2.f32 %v1345_v16 }
0x198a   :  { %v1475_v15 = vpop.eup %1474 }
0x198b   :  { %1094 = vrot.lane.b32.xlu0 %v1475_v15, %s1615_s2 }
0x198c   :  { %v1477_v17 = vpop.eup %1476 }
0x198d   :  { %v1075_v18 = vadd.f32 1.0, %v1477_v17 }
0x198f   :  { %1478 = vrcp.f32 %v1075_v18  ;;  %v1087_v56 = vand.u32 2147483648, %v1075_v18  ;;  %vm1081_vm7 = vweird.f32 %v1075_v18  ;;  %v1085_v58 = vand.u32 2147483647, %v1075_v18 }
0x1990   :  { %1480 = vtanh.f32 %v1921_v4 }
0x1991   :  { %v1088_v59 = vor.u32 1.1754944e-38, %v1087_v56  ;;  %vm1086_vm9 = vcmp.eq.f32.partialorder %v1085_v58, 8.507059e+37 }
0x1995   :  { %v1479_v53 = vpop.eup %1478 }
0x1996   :  { %v1077_v54 = vmul.f32 %v1479_v53, %v1075_v18  ;;  %vm1082_vm6 = vweird.f32 %v1479_v53  ;;  %v1481_v23 = vpop.eup %1480 }
0x1997   :  { %vm1083_vm8 = vmor %vm1081_vm7, %vm1082_vm6 }
0x1998   :  { %v1078_v19 = vsub.f32 1.0, %v1077_v54 }
0x199a   :  { %v1079_v55 = vmul.f32 %v1479_v53, %v1078_v19 }
0x199c   :  { %v1080_v57 = vadd.f32 %v1479_v53, %v1079_v55 }
0x199e   :  { %v1084_v20 = vsel %vm1083_vm8, %v1479_v53, %v1080_v57 }
0x199f   :  { %v1089_v60 = vsel %vm1086_vm9, %v1088_v59, %v1084_v20 }
0x19a0   :  { %v1092_v24 = vmul.f32 %v1089_v60, %v1039_v7 }
0x19fd   :  { %v1095_v21 = vpop.permute.xlu0 %1094 }
0x19fe   :  { %v1097_v22 = vmul.f32 %v1095_v21, %v1089_v60 }
0x1a00   :  { %1099 = vrot.lane.b32.xlu1 %v1097_v22, %s1616_s16 }
0x1a08   :  { %663 = vrot.lane.b32.xlu1 %v1481_v23, %s1615_s2 }
0x1a72   :  { %v1100_v25 = vpop.permute.xlu1 %1099 }
0x1a73   :  { %v1987_v26 = vadd.f32 %v1100_v25, %v1092_v24 }
0x1a75   :  { %1482 = vtanh.f32 %v1987_v26 }
0x1a76   :  { %1484 = vpow2.f32 %v1326_v28 }
0x1a7a   :  { %v664_v41 = vpop.permute.xlu1 %663 }
0x1a7b   :  { %v1483_v27 = vpop.eup %1482 }
0x1a7c   :  { %1105 = vrot.lane.b32.xlu2 %v1483_v27, %s1615_s2  ;;  %v1485_v29 = vpop.eup %1484 }
0x1a7d   :  { %v644_v31 = vadd.f32 1.0, %v1485_v29 }
0x1a7f   :  { %1486 = vrcp.f32 %v644_v31  ;;  %v656_v39 = vand.u32 2147483648, %v644_v31  ;;  %vm650_vm11 = vweird.f32 %v644_v31  ;;  %v654_v30 = vand.u32 2147483647, %v644_v31 }
0x1a81   :  { %v657_v4 = vor.u32 1.1754944e-38, %v656_v39  ;;  %vm655_vm13 = vcmp.eq.f32.partialorder %v654_v30, 8.507059e+37 }
0x1a85   :  { %v1487_v32 = vpop.eup %1486 }
0x1a86   :  { %v646_v33 = vmul.f32 %v1487_v32, %v644_v31  ;;  %vm651_vm10 = vweird.f32 %v1487_v32 }
0x1a87   :  { %vm652_vm12 = vmor %vm650_vm11, %vm651_vm10 }
0x1a88   :  { %v647_v34 = vsub.f32 1.0, %v646_v33 }
0x1a8a   :  { %v648_v37 = vmul.f32 %v1487_v32, %v647_v34 }
0x1a8c   :  { %v649_v38 = vadd.f32 %v1487_v32, %v648_v37 }
0x1a8e   :  { %v653_v40 = vsel %vm652_vm12, %v1487_v32, %v649_v38 }
0x1a8f   :  { %v658_v43 = vsel %vm655_vm13, %v657_v4, %v653_v40 }
0x1a90   :  { %v666_v44 = vmul.f32 %v664_v41, %v658_v43  ;;  %v661_v51 = vmul.f32 %v658_v43, %v1880_v42 }
0x1ad6   :  { %v1106_v36 = vpop.permute.xlu2 %1105 }
0x1ad7   :  { %v1108_v0 = vmul.f32 %v1106_v36, %v1089_v60 }
0x1ad9   :  { %1110 = vrot.lane.b32.xlu0 %v1108_v0, %s1616_s16 }
0x1ae1   :  { %668 = vrot.lane.b32.xlu0 %v666_v44, %s1616_s16 }
0x1b4b   :  { %v1994_v45 = vpop.permute.xlu0 %1110 }
0x1b4c   :  { %1346 = vmatmul.msk.f32.vlgmr.msra.gmra.mxu1 %vm175_vm5, %v1994_v45 }
0x1b53   :  { %v669_v50 = vpop.permute.xlu0 %668 }
0x1b54   :  { %1352 = vmatmul.msk.f32.vlgmr.msrb.gmra.mxu1 %vm175_vm5, %v1948_v12  ;;  %v671_v52 = vadd.f32 %v669_v50, %v661_v51 }
0x1b5c   :  { %1353 = vmatmul.msk.f32.gmra.mxu1 %vm175_vm5, %v1961_v35 }
0x1b64   :  { %1354 = vmatmul.msk.f32.gmra.mxu1 %vm175_vm5, %v1974_v10 }
0x1bc9   :  { %v1131_v48 = vpop.f32.mrf.mxu1 }
0x1bca   :  { %v1134_v49 = vadd.f32 %v1131_v48, %v731_v47 }
0x1bcc   :  { %1488 = vtanh.f32 %v1134_v49  ;;  %v1347_v5 = vmul.f32 -1.442695, %v1134_v49 }
0x1bcd   :  { %1490 = vtanh.f32 %v671_v52 }
0x1bce   :  { %1492 = vpow2.f32 %v1347_v5 }
0x1bd1   :  { %v1271_v61 = vpop.f32.mrf.mxu1 }
0x1bd2   :  { %v1489_v62 = vpop.eup %1488  ;;  %v1272_v12 = vadd.f32 %v1919_v2, %v1271_v61 }
0x1bd3   :  { %1157 = vrot.lane.b32.xlu2 %v1489_v62, %s1615_s2  ;;  %v1491_v63 = vpop.eup %1490 }
0x1bd4   :  { %1291 = vst [vmem:[%s2057_s9 + $0x10] sm:$0xff] %v1272_v12  ;;  %v1493_v6 = vpop.eup %1492 }
0x1bd5   :  { %v1138_v9 = vadd.f32 1.0, %v1493_v6 }
0x1bd7   :  { %1494 = vrcp.f32 %v1138_v9  ;;  %v1150_v15 = vand.u32 2147483648, %v1138_v9  ;;  %vm1144_vm15 = vweird.f32 %v1138_v9  ;;  %v1148_v16 = vand.u32 2147483647, %v1138_v9 }
0x1bd9   :  { %v1274_v35 = vpop.f32.mrf.mxu1  ;;  %v1151_v18 = vor.u32 1.1754944e-38, %v1150_v15  ;;  %vm1149_vm2 = vcmp.eq.f32.partialorder %v1148_v16, 8.507059e+37 }
0x1bda   :  { %v1275_v1 = vadd.f32 %v1919_v2, %v1274_v35 }
0x1bdb   :  { %674 = vrot.lane.b32.xlu2 %v1491_v63, %s1615_s2 }
0x1bdc   :  { %1292 = vst [vmem:[%s2057_s9 + $0x18] sm:$0xff] %v1275_v1 }
0x1bdd   :  { %v1495_v10 = vpop.eup %1494 }
0x1bde   :  { %v1140_v11 = vmul.f32 %v1495_v10, %v1138_v9  ;;  %vm1145_vm14 = vweird.f32 %v1495_v10 }
0x1bdf   :  { %vm1146_vm1 = vmor %vm1144_vm15, %vm1145_vm14 }
0x1be0   :  { %v1141_v13 = vsub.f32 1.0, %v1140_v11 }
0x1be1   :  { %v1277_v42 = vpop.f32.mrf.mxu1 }
0x1be2   :  { %v1278_v7 = vadd.f32 %v1919_v2, %v1277_v42  ;;  %v1142_v8 = vmul.f32 %v1495_v10, %v1141_v13 }
0x1be4   :  { %1293 = vst [vmem:[%s2057_s9 + $0x20] sm:$0xff] %v1278_v7  ;;  %v1143_v14 = vadd.f32 %v1495_v10, %v1142_v8 }
0x1be6   :  { %v1147_v17 = vsel %vm1146_vm1, %v1495_v10, %v1143_v14 }
0x1be7   :  { %v1152_v54 = vsel %vm1149_vm2, %v1151_v18, %v1147_v17 }
0x1be8   :  { %v1155_v56 = vmul.f32 %v1152_v54, %v1987_v26 }
0x1c2d   :  { %v1158_v53 = vpop.permute.xlu2 %1157 }
0x1c2e   :  { %v1160_v19 = vmul.f32 %v1158_v53, %v1152_v54 }
0x1c30   :  { %1162 = vrot.lane.b32.xlu1 %v1160_v19, %s1616_s16 }
0x1c35   :  { %v675_v55 = vpop.permute.xlu2 %674 }
0x1c36   :  { %v677_v57 = vmul.f32 %v675_v55, %v658_v43 }
0x1c38   :  { %691 = vrot.lane.b32.xlu1 %v677_v57, %s1616_s16 }
0x1ca2   :  { %v1163_v58 = vpop.permute.xlu1 %1162 }
0x1ca3   :  { %v1165_v20 = vadd.f32 %v1163_v58, %v1155_v56 }
0x1ca5   :  { %1496 = vtanh.f32 %v1165_v20 }
0x1caa   :  { %v692_v59 = vpop.permute.xlu1 %691 }
0x1cab   :  { %v1497_v21 = vpop.eup %1496  ;;  %1334 = vmatmul.msk.f32.gmra.mxu3 %vm175_vm5, %v692_v59 }
0x1cac   :  { %1168 = vrot.lane.b32.xlu0 %v1497_v21, %s1615_s2 }
0x1d1e   :  { %v1169_v60 = vpop.permute.xlu0 %1168 }
0x1d1f   :  { %v1171_v22 = vmul.f32 %v1169_v60, %v1152_v54 }
0x1d21   :  { %1173 = vrot.lane.b32.xlu2 %v1171_v22, %s1616_s16 }
0x1d2e   :  { %v733_v24 = vpop.f32.mrf.mxu3 }
0x1d2f   :  { %v734_v25 = vadd.f32 %v1872_v3, %v733_v24 }
0x1d7b   :  { %v1174_v23 = vpop.permute.xlu2 %1173 }
0x1d7c   :  { %1348 = vmatmul.msk.f32.vlgmr.msra.gmra.mxu2 %vm175_vm5, %v1174_v23 }
0x1d84   :  { %1355 = vmatmul.msk.f32.vlgmr.msrb.gmra.mxu2 %vm175_vm5, %v1994_v45 }
0x1d8c   :  { %1356 = vmatmul.msk.f32.gmra.mxu2 %vm175_vm5, %v1174_v23 }
0x1dff   :  { %v1194_v26 = vpop.f32.mrf.mxu2 }
0x1e00   :  { %v1197_v27 = vadd.f32 %v1194_v26, %v734_v25 }
0x1e02   :  { %1498 = vtanh.f32 %v1197_v27  ;;  %v1349_v3 = vmul.f32 -1.442695, %v1197_v27 }
0x1e04   :  { %1500 = vpow2.f32 %v1349_v3 }
0x1e07   :  { %v1280_v28 = vpop.f32.mrf.mxu2 }
0x1e08   :  { %v1499_v29 = vpop.eup %1498  ;;  %v1281_v31 = vadd.f32 %v1919_v2, %v1280_v28 }
0x1e09   :  { %1220 = vrot.lane.b32.xlu0 %v1499_v29, %s1615_s2 }
0x1e0a   :  { %1294 = vst [vmem:[%s2057_s9 + $0x28] sm:$0xff] %v1281_v31  ;;  %v1501_v34 = vpop.eup %1500 }
0x1e0b   :  { %v1201_v37 = vadd.f32 1.0, %v1501_v34 }
0x1e0d   :  { %1502 = vrcp.f32 %v1201_v37  ;;  %v1213_v40 = vand.u32 2147483648, %v1201_v37  ;;  %vm1207_vm4 = vweird.f32 %v1201_v37  ;;  %v1211_v4 = vand.u32 2147483647, %v1201_v37 }
0x1e0f   :  { %v1283_v32 = vpop.f32.mrf.mxu2  ;;  %v1214_v43 = vor.u32 1.1754944e-38, %v1213_v40  ;;  %vm1212_vm6 = vcmp.eq.f32.partialorder %v1211_v4, 8.507059e+37 }
0x1e10   :  { %v1284_v33 = vadd.f32 %v1919_v2, %v1283_v32 }
0x1e12   :  { %1295 = vst [vmem:[%s2057_s9 + $0x30] sm:$0xff] %v1284_v33 }
0x1e13   :  { %v1503_v36 = vpop.eup %1502 }
0x1e14   :  { %v1203_v38 = vmul.f32 %v1503_v36, %v1201_v37  ;;  %vm1208_vm3 = vweird.f32 %v1503_v36 }
0x1e15   :  { %vm1209_vm0 = vmor %vm1207_vm4, %vm1208_vm3 }
0x1e16   :  { %v1204_v0 = vsub.f32 1.0, %v1203_v38 }
0x1e18   :  { %v1205_v39 = vmul.f32 %v1503_v36, %v1204_v0 }
0x1e1a   :  { %v1206_v30 = vadd.f32 %v1503_v36, %v1205_v39 }
0x1e1c   :  { %v1210_v41 = vsel %vm1209_vm0, %v1503_v36, %v1206_v30 }
0x1e1d   :  { %v1215_v45 = vsel %vm1212_vm6, %v1214_v43, %v1210_v41 }
0x1e1e   :  { %v1218_v47 = vmul.f32 %v1215_v45, %v1165_v20 }
0x1e7b   :  { %v1221_v44 = vpop.permute.xlu0 %1220 }
0x1e7c   :  { %v1223_v46 = vmul.f32 %v1221_v44, %v1215_v45 }
0x1e7e   :  { %1225 = vrot.lane.b32.xlu1 %v1223_v46, %s1616_s16 }
0x1ef0   :  { %v1226_v48 = vpop.permute.xlu1 %1225 }
0x1ef1   :  { %v1228_v49 = vadd.f32 %v1226_v48, %v1218_v47 }
0x1ef3   :  { %1504 = vtanh.f32 %v1228_v49 }
0x1ef9   :  { %v1505_v50 = vpop.eup %1504 }
0x1efa   :  { %1231 = vrot.lane.b32.xlu2 %v1505_v50, %s1615_s2 }
0x1f54   :  { %v1232_v51 = vpop.permute.xlu2 %1231 }
0x1f55   :  { %v1234_v52 = vmul.f32 %v1232_v51, %v1215_v45 }
0x1f57   :  { %1244 = vrot.lane.b32.xlu0 %v1234_v52, %s1616_s16 }
0x1fc9   :  { %v1245_v61 = vpop.permute.xlu0 %1244 }
0x1fca   :  { %1357 = vmatmul.msk.f32.gmra.mxu2 %vm175_vm5, %v1245_v61 }
0x204d   :  { %v1286_v62 = vpop.f32.mrf.mxu2 }
0x204e   :  { %v1287_v12 = vadd.f32 %v1919_v2, %v1286_v62 }
0x2050   :  { %1296 = vst [vmem:[%s2057_s9 + $0x38] sm:$0xff] %v1287_v12 }
0x2051   :  { %1301 = vsyncpa [#allocation3], 1 }
0x2052   :  { %1302 = vsyncpa [#allocation5], 1 }
0x2053   :  { %1303 = vsyncpa [#allocation8], 1 }

</bundles_post_ra>
